<compile_context>
chip_gen: v7x
topology: tpu7x:2x2x1
jax: 0.10.0
libtpu: 0.0.40
codegen_flags: <defaults>
</compile_context>

<pallas_src>
import functools

import jax
import jax.numpy as jnp
from jax.experimental import pallas as pl
from jax.experimental.pallas import tpu as pltpu


EPS = 1e-5          # InstanceNorm1d default eps
NEG_SLOPE = 0.2     # LeakyReLU negative slope

H1, H2 = 100, 150            # true hidden widths of the PyTorch module
H1_PAD, H2_PAD = 128, 256    # lane-dense padded widths (multiples of 128)

VMEM_BUDGET = 40 * 1024 * 1024     # keep well under v7x's 64 MiB physical VMEM


def _round_up(n, m):
    return ((n + m - 1) // m) * m


def _leaky_relu(h):
    # max(h, 0.2*h): 2 VPU ops/elem (vs cmp+mul+select = 3).
    return jnp.maximum(h, NEG_SLOPE * h)


def critic_kernel(x_ref, w1_ref, b1_ref, w2_ref, b2_ref, w3_ref, b3_ref, out_ref):
    # ---------- Block 1: Linear(F->100) ----------
    # x is streamed as bf16, batch on sublanes, padded features on lanes.
    h1 = jnp.dot(x_ref[...], w1_ref[...],
                 preferred_element_type=jnp.float32) + b1_ref[...]     # (TB, 128) f32
    # Padded lanes (>= 100) are exactly zero: zero-padded w1 columns / b1 lanes.

    # ---------- Switch to batch-on-lanes BEFORE the norm ----------
    # (TB, 128) -> (128, TB): native-tiled f32 transpose on the XLU.  All
    # InstanceNorm reductions below are now axis=0 sublane adds (VALU), and the
    # final per-sample scalars land lane-dense.
    h1t = jnp.transpose(h1)                                            # (128, TB) f32

    # ---------- InstanceNorm(100) + LeakyReLU ----------
    inv_h1 = 1.0 / H1
    mean1 = jnp.sum(h1t, axis=0, keepdims=True) * inv_h1               # (1, TB)
    ex2_1 = jnp.sum(h1t * h1t, axis=0, keepdims=True) * inv_h1
    var1 = ex2_1 - mean1 * mean1
    # Padded rows become -mean1 after centering (garbage) -- annihilated by the
    # zero-padded columns of w2 in the next matmul.
    h1n = _leaky_relu((h1t - mean1) * jax.lax.rsqrt(var1 + EPS))       # (128, TB) f32

    # ---------- Block 2: Linear(100->150) ----------
    h2 = jnp.dot(w2_ref[...], h1n.astype(jnp.bfloat16),
                 preferred_element_type=jnp.float32) + b2_ref[...]     # (256, TB) f32
    # Rows >= 150 are exactly zero (zero-padded w2 rows / b2 rows).

    # ---------- InstanceNorm(150) + LeakyReLU (scale deferred) ----------
    inv_h2 = 1.0 / H2
    mean2 = jnp.sum(h2, axis=0, keepdims=True) * inv_h2                # (1, TB)
    ex2_2 = jnp.sum(h2 * h2, axis=0, keepdims=True) * inv_h2
    var2 = ex2_2 - mean2 * mean2
    # leaky(s*x) = s*leaky(x) for s > 0, so apply rsqrt AFTER the head reduction.
    h2n = _leaky_relu(h2 - mean2)                                      # (256, TB) f32
    # Padded rows are garbage (-mean2 through leaky) -- killed by zero w3 rows.

    # ---------- Head: Linear(150->1) on the VPU + sublane reduction ----------
    # (an N=1 MXU matmul would waste 127/255 MXU output columns).
    out_row = (jnp.sum(h2n * w3_ref[...], axis=0, keepdims=True)
               * jax.lax.rsqrt(var2 + EPS)) + b3_ref[...]              # (1, TB)
    out_ref[...] = out_row.astype(out_ref.dtype)                       # lane-dense store


def _prepare_kernel_params(params, f_pad):
    """Pad to lane-dense widths, lay out for the kernel, cast MXU weights to bf16."""
    w1, b1 = params["w1"], params["b1"]        # (F, 100), (100,)
    w2, b2 = params["w2"], params["b2"]        # (100, 150), (150,)
    w3, b3 = params["w3"], params["b3"]        # (150, 1), (1,)
    feat = w1.shape[0]

    w1p = (jnp.zeros((f_pad, H1_PAD), jnp.float32)
           .at[:feat, :H1].set(w1).astype(jnp.bfloat16))
    b1p = jnp.zeros((1, H1_PAD), jnp.float32).at[0, :H1].set(b1)
    # Second layer stored (out, in) so the kernel runs it in batch-on-lanes
    # orientation (this is PyTorch's native Linear weight layout anyway).
    w2p = (jnp.zeros((H2_PAD, H1_PAD), jnp.float32)
           .at[:H2, :H1].set(w2.T).astype(jnp.bfloat16))
    b2p = jnp.zeros((H2_PAD, 1), jnp.float32).at[:H2, 0].set(b2)
    w3p = jnp.zeros((H2_PAD, 1), jnp.float32).at[:H2, :].set(w3)       # head on VPU -> f32
    b3p = b3.reshape(1, 1).astype(jnp.float32)
    return w1p, b1p, w2p, b2p, w3p, b3p


def _vmem_estimate(tb, f_pad):
    """Rough per-call VMEM footprint (double-buffered I/O + live intermediates)."""
    x_db = 2 * tb * f_pad * 2                               # x tile, bf16, double-buffered
    weights = 2 * (f_pad * H1_PAD * 2 + H2_PAD * H1_PAD * 2  # w1/w2 bf16 (x2 buffers)
                   + H1_PAD * 4 + 2 * H2_PAD * 4 + 4)        # biases + w3 f32
    inter = 2 * tb * H1_PAD * 4 + 2 * H2_PAD * tb * 4        # h1/h1t + h2/h2n f32
    out_db = 2 * tb * 4
    return x_db + weights + inter + out_db


def _choose_tile(batch, f_pad, block_rows):
    b128 = _round_up(max(batch, 1), 128)
    tb = max(128, min(_round_up(block_rows, 128), b128))
    # Prefer >= 2 tiles when the batch allows, so both v7x TensorCores get work
    # (no-op on single-TC v5e/v6e).
    if b128 >= 256 and _round_up(batch, tb) // tb < 2:
        tb = max(128, _round_up(b128 // 2, 128))
    # Shrink until the rough VMEM estimate fits the budget (large F guard).
    while tb > 128 and _vmem_estimate(tb, f_pad) > VMEM_BUDGET:
        tb = max(128, _round_up(tb // 2, 128))
    return tb


@functools.partial(jax.jit, static_argnames=("block_rows",))
def critic_forward(x, params, *, block_rows=1024):
    """x: (B, F) float32.  params: dict of unpadded weights (see init_params)."""
    if params["w3"].shape[1] != 1:
        # TODO(synk): the fused VPU head assumes output_dim == 1 (the module
        # default); for wider heads keep the final matmul on the MXU instead.
        raise NotImplementedError("critic_forward only supports output_dim == 1")

    B, F = x.shape
    f_pad = _round_up(F, 128)                               # lane-dense contraction
    tb = _choose_tile(B, f_pad, block_rows)
    b_pad = _round_up(B, tb)
    n_tiles = b_pad // tb

    w1p, b1p, w2p, b2p, w3p, b3p = _prepare_kernel_params(params, f_pad)

    # Zero-pad batch & features and stream x as bf16 (cast fuses with the pad).
    x_p = jnp.pad(x, ((0, b_pad - B), (0, f_pad - F))).astype(jnp.bfloat16)

    out = pl.pallas_call(
        critic_kernel,
        out_shape=jax.ShapeDtypeStruct((n_tiles, 1, tb), jnp.float32),
        grid=(n_tiles,),
        in_specs=[
            pl.BlockSpec((tb, f_pad), lambda i: (i, 0)),          # x (bf16): streamed per tile
            pl.BlockSpec((f_pad, H1_PAD), lambda i: (0, 0)),      # w1 (bf16), resident
            pl.BlockSpec((1, H1_PAD), lambda i: (0, 0)),          # b1
            pl.BlockSpec((H2_PAD, H1_PAD), lambda i: (0, 0)),     # w2 (bf16, out-major), resident
            pl.BlockSpec((H2_PAD, 1), lambda i: (0, 0)),          # b2 (column)
            pl.BlockSpec((H2_PAD, 1), lambda i: (0, 0)),          # w3 (column)
            pl.BlockSpec((1, 1), lambda i: (0, 0)),               # b3
        ],
        out_specs=pl.BlockSpec((None, 1, tb), lambda i: (i, 0, 0)),  # lane-dense row per tile
        compiler_params=pltpu.CompilerParams(
            dimension_semantics=("parallel",),            # batch tiles independent (v7x dual-TC)
            vmem_limit_bytes=48 * 1024 * 1024,            # headroom on v7x's 64 MiB VMEM
        ),
    )(x_p, w1p, b1p, w2p, b2p, w3p, b3p)

    return out.reshape(b_pad, 1)[:B]


def init_params(key, feature_dimension, output_dim=1):
    """Deterministic PyTorch-style init: U(-1/sqrt(fan_in), 1/sqrt(fan_in))."""
    dims = [(feature_dimension, H1), (H1, H2), (H2, output_dim)]
    params = {}
    keys = jax.random.split(key, 2 * len(dims))
    for i, (fan_in, fan_out) in enumerate(dims):
        bound = 1.0 / float(fan_in) ** 0.5
        params[f"w{i + 1}"] = jax.random.uniform(
            keys[2 * i], (fan_in, fan_out), minval=-bound, maxval=bound, dtype=jnp.float32)
        params[f"b{i + 1}"] = jax.random.uniform(
            keys[2 * i + 1], (fan_out,), minval=-bound, maxval=bound, dtype=jnp.float32)
    return params


def _instance_norm_rows_ref(h):
    mean = jnp.mean(h, axis=-1, keepdims=True)
    var = jnp.mean((h - mean) ** 2, axis=-1, keepdims=True)
    return (h - mean) * jax.lax.rsqrt(var + EPS)


def critic_reference(x, params, matmul_dtype=jnp.bfloat16):
    """Pure-JAX reference; matmul_dtype matches the kernel's MXU operand dtype."""
    h = jnp.dot(x.astype(matmul_dtype), params["w1"].astype(matmul_dtype),
                preferred_element_type=jnp.float32) + params["b1"]
    h = _leaky_relu(_instance_norm_rows_ref(h))
    h = jnp.dot(h.astype(matmul_dtype), params["w2"].astype(matmul_dtype),
                preferred_element_type=jnp.float32) + params["b2"]
    h = _leaky_relu(_instance_norm_rows_ref(h))
    return jnp.dot(h, params["w3"], preferred_element_type=jnp.float32) + params["b3"]


if __name__ == "__main__":
    key = jax.random.PRNGKey(0)
    k_x, k_p = jax.random.split(key)

    batch = 8
    feature_dimension = 32

    x = jax.random.normal(k_x, (batch, feature_dimension), dtype=jnp.float32)
    params = init_params(k_p, feature_dimension, output_dim=1)

    out = critic_forward(x, params)
    out = jax.block_until_ready(out)
    assert out.shape == (batch, 1)

    # Matched reference (same bf16 MXU operands, f32 statistics): tight check.
    ref_bf16 = critic_reference(x, params, matmul_dtype=jnp.bfloat16)
    assert jnp.allclose(out, ref_bf16, atol=5e-3, rtol=5e-3), (
        f"mismatch vs bf16-matmul reference: {jnp.max(jnp.abs(out - ref_bf16))}")

    # Full-f32 reference: loose sanity check on the module semantics.
    ref_f32 = critic_reference(x, params, matmul_dtype=jnp.float32)
    assert jnp.allclose(out, ref_f32, atol=1e-1, rtol=1e-1), (
        f"mismatch vs f32 reference: {jnp.max(jnp.abs(out - ref_f32))}")

    print("KERNEL_OK")
</pallas_src>

<mosaic_0001>
module attributes {stable_mosaic.version = 11 : i64} {
  func.func @critic_kernel(%arg0: i32, %arg1: memref<128x128xbf16, #tpu.memory_space<vmem>>, %arg2: memref<128x128xbf16, #tpu.memory_space<vmem>>, %arg3: memref<1x128xf32, #tpu.memory_space<vmem>>, %arg4: memref<256x128xbf16, #tpu.memory_space<vmem>>, %arg5: memref<256x1xf32, #tpu.memory_space<vmem>>, %arg6: memref<256x1xf32, #tpu.memory_space<vmem>>, %arg7: memref<1x1xf32, #tpu.memory_space<vmem>>, %arg8: memref<1x1x128xf32, #tpu.memory_space<vmem>>) attributes {dimension_semantics = [#tpu.dimension_semantics<parallel>], iteration_bounds = array<i64: 1>, scalar_prefetch = 0 : i64, scratch_operands = 0 : i64, tpu.core_type = #tpu.core_type<tc>, window_params = [{transform_indices = @transform_0, window_bounds = array<i64: 128, 128>}, {pipeline_mode = #tpu.pipeline_mode<synchronous>, transform_indices = @transform_1, window_bounds = array<i64: 128, 128>}, {pipeline_mode = #tpu.pipeline_mode<synchronous>, transform_indices = @transform_2, window_bounds = array<i64: 1, 128>}, {pipeline_mode = #tpu.pipeline_mode<synchronous>, transform_indices = @transform_3, window_bounds = array<i64: 256, 128>}, {pipeline_mode = #tpu.pipeline_mode<synchronous>, transform_indices = @transform_4, window_bounds = array<i64: 256, 1>}, {pipeline_mode = #tpu.pipeline_mode<synchronous>, transform_indices = @transform_5, window_bounds = array<i64: 256, 1>}, {pipeline_mode = #tpu.pipeline_mode<synchronous>, transform_indices = @transform_6, window_bounds = array<i64: 1, 1>}, {transform_indices = @transform_7, window_bounds = array<i64: 1, 1, 128>}]} {
    %c0 = arith.constant 0 : index
    %c0_0 = arith.constant 0 : index
    %0 = vector.load %arg1[%c0, %c0_0] : memref<128x128xbf16, #tpu.memory_space<vmem>>, vector<128x128xbf16>
    %c0_1 = arith.constant 0 : index
    %c0_2 = arith.constant 0 : index
    %1 = vector.load %arg2[%c0_1, %c0_2] : memref<128x128xbf16, #tpu.memory_space<vmem>>, vector<128x128xbf16>
    %cst = arith.constant dense<0.000000e+00> : vector<128x128xf32>
    %2 = tpu.matmul %0, %1, %cst {dimension_numbers = #tpu.dot_dimension_numbers<[1], [0], [0], [1], [0, 0, 1, 1], [], []>} : vector<128x128xbf16>, vector<128x128xbf16>, vector<128x128xf32> -> vector<128x128xf32>
    %c0_3 = arith.constant 0 : index
    %c0_4 = arith.constant 0 : index
    %3 = vector.load %arg3[%c0_3, %c0_4] : memref<1x128xf32, #tpu.memory_space<vmem>>, vector<1x128xf32>
    %4 = vector.broadcast %3 : vector<1x128xf32> to vector<128x128xf32>
    %5 = arith.addf %2, %4 : vector<128x128xf32>
    %6 = tpu.transpose %5, [1, 0] : vector<128x128xf32> -> vector<128x128xf32>
    %cst_5 = arith.constant dense<0.000000e+00> : vector<128xf32>
    %7 = vector.multi_reduction <add>, %6, %cst_5 [0] : vector<128x128xf32> to vector<128xf32>
    %8 = vector.shape_cast %7 : vector<128xf32> to vector<1x128xf32>
    %cst_6 = arith.constant 0.00999999977 : f32
    %9 = vector.broadcast %cst_6 : f32 to vector<1x128xf32>
    %10 = arith.mulf %8, %9 : vector<1x128xf32>
    %11 = arith.mulf %6, %6 : vector<128x128xf32>
    %cst_7 = arith.constant dense<0.000000e+00> : vector<128xf32>
    %12 = vector.multi_reduction <add>, %11, %cst_7 [0] : vector<128x128xf32> to vector<128xf32>
    %13 = vector.shape_cast %12 : vector<128xf32> to vector<1x128xf32>
    %cst_8 = arith.constant 0.00999999977 : f32
    %14 = vector.broadcast %cst_8 : f32 to vector<1x128xf32>
    %15 = arith.mulf %13, %14 : vector<1x128xf32>
    %16 = arith.mulf %10, %10 : vector<1x128xf32>
    %17 = arith.subf %15, %16 : vector<1x128xf32>
    %18 = vector.broadcast %10 : vector<1x128xf32> to vector<128x128xf32>
    %19 = arith.subf %6, %18 : vector<128x128xf32>
    %cst_9 = arith.constant 9.99999974E-6 : f32
    %20 = vector.broadcast %cst_9 : f32 to vector<1x128xf32>
    %21 = arith.addf %17, %20 : vector<1x128xf32>
    %22 = math.rsqrt %21 : vector<1x128xf32>
    %23 = vector.broadcast %22 : vector<1x128xf32> to vector<128x128xf32>
    %24 = arith.mulf %19, %23 : vector<128x128xf32>
    %cst_10 = arith.constant 2.000000e-01 : f32
    %25 = vector.broadcast %cst_10 : f32 to vector<128x128xf32>
    %26 = arith.mulf %25, %24 : vector<128x128xf32>
    %27 = arith.maximumf %24, %26 : vector<128x128xf32>
    %c0_11 = arith.constant 0 : index
    %c0_12 = arith.constant 0 : index
    %28 = vector.load %arg4[%c0_11, %c0_12] : memref<256x128xbf16, #tpu.memory_space<vmem>>, vector<256x128xbf16>
    %29 = arith.truncf %27 : vector<128x128xf32> to vector<128x128xbf16>
    %cst_13 = arith.constant dense<0.000000e+00> : vector<256x128xf32>
    %30 = tpu.matmul %28, %29, %cst_13 {dimension_numbers = #tpu.dot_dimension_numbers<[1], [0], [0], [1], [0, 0, 1, 1], [], []>} : vector<256x128xbf16>, vector<128x128xbf16>, vector<256x128xf32> -> vector<256x128xf32>
    %c0_14 = arith.constant 0 : index
    %c0_15 = arith.constant 0 : index
    %31 = vector.load %arg5[%c0_14, %c0_15] : memref<256x1xf32, #tpu.memory_space<vmem>>, vector<256x1xf32>
    %32 = vector.broadcast %31 : vector<256x1xf32> to vector<256x128xf32>
    %33 = arith.addf %30, %32 : vector<256x128xf32>
    %cst_16 = arith.constant dense<0.000000e+00> : vector<128xf32>
    %34 = vector.multi_reduction <add>, %33, %cst_16 [0] : vector<256x128xf32> to vector<128xf32>
    %35 = vector.shape_cast %34 : vector<128xf32> to vector<1x128xf32>
    %cst_17 = arith.constant 0.00666666683 : f32
    %36 = vector.broadcast %cst_17 : f32 to vector<1x128xf32>
    %37 = arith.mulf %35, %36 : vector<1x128xf32>
    %38 = arith.mulf %33, %33 : vector<256x128xf32>
    %cst_18 = arith.constant dense<0.000000e+00> : vector<128xf32>
    %39 = vector.multi_reduction <add>, %38, %cst_18 [0] : vector<256x128xf32> to vector<128xf32>
    %40 = vector.shape_cast %39 : vector<128xf32> to vector<1x128xf32>
    %cst_19 = arith.constant 0.00666666683 : f32
    %41 = vector.broadcast %cst_19 : f32 to vector<1x128xf32>
    %42 = arith.mulf %40, %41 : vector<1x128xf32>
    %43 = arith.mulf %37, %37 : vector<1x128xf32>
    %44 = arith.subf %42, %43 : vector<1x128xf32>
    %45 = vector.broadcast %37 : vector<1x128xf32> to vector<256x128xf32>
    %46 = arith.subf %33, %45 : vector<256x128xf32>
    %cst_20 = arith.constant 2.000000e-01 : f32
    %47 = vector.broadcast %cst_20 : f32 to vector<256x128xf32>
    %48 = arith.mulf %47, %46 : vector<256x128xf32>
    %49 = arith.maximumf %46, %48 : vector<256x128xf32>
    %c0_21 = arith.constant 0 : index
    %c0_22 = arith.constant 0 : index
    %50 = vector.load %arg6[%c0_21, %c0_22] : memref<256x1xf32, #tpu.memory_space<vmem>>, vector<256x1xf32>
    %51 = vector.broadcast %50 : vector<256x1xf32> to vector<256x128xf32>
    %52 = arith.mulf %49, %51 : vector<256x128xf32>
    %cst_23 = arith.constant dense<0.000000e+00> : vector<128xf32>
    %53 = vector.multi_reduction <add>, %52, %cst_23 [0] : vector<256x128xf32> to vector<128xf32>
    %54 = vector.shape_cast %53 : vector<128xf32> to vector<1x128xf32>
    %cst_24 = arith.constant 9.99999974E-6 : f32
    %55 = vector.broadcast %cst_24 : f32 to vector<1x128xf32>
    %56 = arith.addf %44, %55 : vector<1x128xf32>
    %57 = math.rsqrt %56 : vector<1x128xf32>
    %58 = arith.mulf %54, %57 : vector<1x128xf32>
    %c0_25 = arith.constant 0 : index
    %c0_26 = arith.constant 0 : index
    %59 = vector.load %arg7[%c0_25, %c0_26] : memref<1x1xf32, #tpu.memory_space<vmem>>, vector<1x1xf32>
    %60 = vector.broadcast %59 : vector<1x1xf32> to vector<1x128xf32>
    %61 = arith.addf %58, %60 : vector<1x128xf32>
    %c0_27 = arith.constant 0 : index
    %c0_28 = arith.constant 0 : index
    %c0_29 = arith.constant 0 : index
    %62 = vector.load %arg8[%c0_27, %c0_28, %c0_29] : memref<1x1x128xf32, #tpu.memory_space<vmem>>, vector<1x1x128xf32>
    %63 = vector.shape_cast %62 : vector<1x1x128xf32> to vector<1x128xf32>
    %64 = vector.shape_cast %61 : vector<1x128xf32> to vector<1x1x128xf32>
    tpu.vector_store %arg8[%c0_27, %c0_28, %c0_29], %64 {strides = array<i32>} : memref<1x1x128xf32, #tpu.memory_space<vmem>>, vector<1x1x128xf32>,
    return
  }
  func.func @transform_0(%arg0: i32) -> (i32, i32) {
    %c0_i32 = arith.constant 0 : i32
    %c0_i32_0 = arith.constant 0 : i32
    return %arg0, %c0_i32 : i32, i32
  }
  func.func @transform_1(%arg0: i32) -> (i32, i32) {
    %c0_i32 = arith.constant 0 : i32
    %c0_i32_0 = arith.constant 0 : i32
    %c0_i32_1 = arith.constant 0 : i32
    return %c0_i32, %c0_i32_0 : i32, i32
  }
  func.func @transform_2(%arg0: i32) -> (i32, i32) {
    %c0_i32 = arith.constant 0 : i32
    %c0_i32_0 = arith.constant 0 : i32
    %c0_i32_1 = arith.constant 0 : i32
    return %c0_i32, %c0_i32_0 : i32, i32
  }
  func.func @transform_3(%arg0: i32) -> (i32, i32) {
    %c0_i32 = arith.constant 0 : i32
    %c0_i32_0 = arith.constant 0 : i32
    %c0_i32_1 = arith.constant 0 : i32
    return %c0_i32, %c0_i32_0 : i32, i32
  }
  func.func @transform_4(%arg0: i32) -> (i32, i32) {
    %c0_i32 = arith.constant 0 : i32
    %c0_i32_0 = arith.constant 0 : i32
    %c0_i32_1 = arith.constant 0 : i32
    return %c0_i32, %c0_i32_0 : i32, i32
  }
  func.func @transform_5(%arg0: i32) -> (i32, i32) {
    %c0_i32 = arith.constant 0 : i32
    %c0_i32_0 = arith.constant 0 : i32
    %c0_i32_1 = arith.constant 0 : i32
    return %c0_i32, %c0_i32_0 : i32, i32
  }
  func.func @transform_6(%arg0: i32) -> (i32, i32) {
    %c0_i32 = arith.constant 0 : i32
    %c0_i32_0 = arith.constant 0 : i32
    %c0_i32_1 = arith.constant 0 : i32
    return %c0_i32, %c0_i32_0 : i32, i32
  }
  func.func @transform_7(%arg0: i32) -> (i32, i32, i32) {
    %c0_i32 = arith.constant 0 : i32
    %c0_i32_0 = arith.constant 0 : i32
    %c0_i32_1 = arith.constant 0 : i32
    return %arg0, %c0_i32, %c0_i32_0 : i32, i32, i32
  }
}

</mosaic_0001>

<bundles_post_ra>
// kernel: critic_forward.1
= control target key start
LH: loop header
LB: loop body
LE: loop exit
PB: predicated region body
PF: predicated region fallthrough
CT: control target
= control target key end

     0   :  { %v1604_v16 = vmov 0   ;;  %s2375_s1 = inlined_call_operand.vmem [shape: bf16[128,128], index: 1, kind: input, shape index: {}]   ;;  %s2376_s0 = inlined_call_operand.vmem [shape: bf16[128,128], index: 0, kind: input, shape index: {}]   ;;  %s2377_s4 = inlined_call_operand.vmem [shape: f32[256,1], index: 4, kind: input, shape index: {}]   ;;  %s2378_s2 = inlined_call_operand.vmem [shape: f32[1,128], index: 2, kind: input, shape index: {}]   ;;  %s2379_s5 = inlined_call_operand.vmem [shape: f32[256,1], index: 5, kind: input, shape index: {}]   ;;  %s2380_s3 = inlined_call_operand.vmem [shape: bf16[256,128], index: 3, kind: input, shape index: {}]   ;;  %s2381_s6 = inlined_call_operand.<no memory space> [shape: f32[1,1], index: 6, kind: input, shape index: {}]   ;;  %s2382_s7 = inlined_call_operand.vmem [shape: f32[1,1,128], index: 7, kind: output, shape index: {}]  }
   0x1   :  { %v1568_v0 = vld [vmem:[%s2375_s1] sm:$0xff]   ;;  %v1569_v1 = vld [vmem:[%s2375_s1 + $0x8] sm:$0xff]   ;;  %v1570_v2 = vld [vmem:[%s2375_s1 + $0x10] sm:$0xff]   ;;  %1566 = vset.pattern.permute.xlu1 %v1604_v16 }
   0x2   :  { %1469 = vmatprep.subr.bf16.mxu0 %v1568_v0  ;;  %v1571_v3 = vld [vmem:[%s2375_s1 + $0x18] sm:$0xff]   ;;  %v1576_v4 = vld [vmem:[%s2376_s0] sm:$0xff]   ;;  %v1573_v6 = vld [vmem:[%s2375_s1 + $0x28] sm:$0xff]  }
   0x3   :  { %1470 = vmatpush3.bf16.msra.mxu0 %v1568_v0  ;;  %1485 = vmatprep.mubr.bf16.mxu0 %v1576_v4  ;;  %v1572_v5 = vld [vmem:[%s2375_s1 + $0x20] sm:$0xff]   ;;  %v1574_v7 = vld [vmem:[%s2375_s1 + $0x30] sm:$0xff]   ;;  %v1575_v8 = vld [vmem:[%s2375_s1 + $0x38] sm:$0xff]  }
   0x4   :  { %1471 = vmatprep.subr.bf16.mxu0 %v1569_v1  ;;  %v1577_v9 = vld [vmem:[%s2376_s0 + $0x8] sm:$0xff]   ;;  %v1578_v10 = vld [vmem:[%s2376_s0 + $0x10] sm:$0xff]   ;;  %v1579_v11 = vld [vmem:[%s2376_s0 + $0x18] sm:$0xff]  }
   0x5   :  { %v1580_v12 = vld [vmem:[%s2376_s0 + $0x20] sm:$0xff]   ;;  %v1581_v13 = vld [vmem:[%s2376_s0 + $0x28] sm:$0xff]   ;;  %v1582_v14 = vld [vmem:[%s2376_s0 + $0x30] sm:$0xff]  }
   0x6   :  { %v1583_v15 = vld [vmem:[%s2376_s0 + $0x38] sm:$0xff]   ;;  %v461_v17 = vld [vmem:[%s2377_s4] sm:$0xff]  ;;  %v462_v18 = vld [vmem:[%s2377_s4 + $0x8] sm:$0xff] }
   0x7   :  { %1472 = vmatpush3.bf16.msra.mxu0 %v1569_v1  ;;  %495 = vperm.xlu1 %1566, %v461_v17   ;;  %v1703_v19 = vld [vmem:[%s2378_s2] ss:$0 sm:$0xff]  ;;  %v463_v25 = vld [vmem:[%s2377_s4 + $0x10] sm:$0xff]  ;;  %v464_v28 = vld [vmem:[%s2377_s4 + $0x18] sm:$0xff] }
   0x8   :  { %1473 = vmatprep.subr.bf16.mxu0 %v1570_v2  ;;  %v465_v33 = vld [vmem:[%s2377_s4 + $0x20] sm:$0xff]  ;;  %v466_v37 = vld [vmem:[%s2377_s4 + $0x28] sm:$0xff]  ;;  %v467_v41 = vld [vmem:[%s2377_s4 + $0x30] sm:$0xff] }
   0x9   :  { %v468_v44 = vld [vmem:[%s2377_s4 + $0x38] sm:$0xff]  ;;  %v469_v49 = vld [vmem:[%s2377_s4 + $0x40] sm:$0xff]  ;;  %v470_v52 = vld [vmem:[%s2377_s4 + $0x48] sm:$0xff] }
   0xa   :  { %v471_v53 = vld [vmem:[%s2377_s4 + $0x50] sm:$0xff]  ;;  %v472_v55 = vld [vmem:[%s2377_s4 + $0x58] sm:$0xff]  ;;  %v473_v57 = vld [vmem:[%s2377_s4 + $0x60] sm:$0xff] }
   0xb   :  { %1474 = vmatpush3.bf16.msra.mxu0 %v1570_v2  ;;  %500 = vperm.xlu1 %1566, %v462_v18   ;;  %v474_v60 = vld [vmem:[%s2377_s4 + $0x68] sm:$0xff]  ;;  %v475_v61 = vld [vmem:[%s2377_s4 + $0x70] sm:$0xff]  ;;  %v476_v63 = vld [vmem:[%s2377_s4 + $0x78] sm:$0xff] }
   0xc   :  { %1475 = vmatprep.subr.bf16.mxu0 %v1571_v3  ;;  %v478_v1 = vld [vmem:[%s2377_s4 + $0x88] sm:$0xff]  ;;  %v480_v4 = vld [vmem:[%s2377_s4 + $0x98] sm:$0xff] }
   0xd   :  { %v1119_v17 = vld [vmem:[%s2379_s5 + $0x18] sm:$0xff]  ;;  %v1121_v18 = vld [vmem:[%s2379_s5 + $0x28] sm:$0xff] }
   0xf   :  { %1476 = vmatpush3.bf16.msra.mxu0 %v1571_v3  ;;  %505 = vperm.xlu1 %1566, %v463_v25   ;;  %v479_v3 = vld [vmem:[%s2377_s4 + $0x90] sm:$0xff]  ;;  %v1585_v25 = vld [vmem:[%s2380_s3 + $0x20] sm:$0xff]  }
  0x10   :  { %1477 = vmatprep.subr.bf16.mxu0 %v1572_v5  ;;  %1525 = vmatprep.mubr.bf16.mxu1 %v1585_v25 }
  0x13   :  { %1478 = vmatpush3.bf16.msra.mxu0 %v1572_v5  ;;  %510 = vperm.xlu1 %1566, %v464_v28   ;;  %v481_v5 = vld [vmem:[%s2377_s4 + $0xa0] sm:$0xff]  ;;  %v1133_v28 = vld [vmem:[%s2379_s5 + $0x88] sm:$0xff] }
  0x14   :  { %1479 = vmatprep.subr.bf16.mxu0 %v1573_v6 }
  0x17   :  { %1480 = vmatpush3.bf16.msra.mxu0 %v1573_v6  ;;  %515 = vperm.xlu1 %1566, %v465_v33   ;;  %v482_v6 = vld [vmem:[%s2377_s4 + $0xa8] sm:$0xff] }
  0x18   :  { %1481 = vmatprep.subr.bf16.mxu0 %v1574_v7 }
  0x1b   :  { %1482 = vmatpush3.bf16.msra.mxu0 %v1574_v7  ;;  %520 = vperm.xlu1 %1566, %v466_v37   ;;  %v483_v7 = vld [vmem:[%s2377_s4 + $0xb0] sm:$0xff] }
  0x1c   :  { %1483 = vmatprep.subr.bf16.mxu0 %v1575_v8 }
  0x1f   :  { %1484 = vmatpush3.bf16.msra.mxu0 %v1575_v8  ;;  %525 = vperm.xlu1 %1566, %v467_v41   ;;  %v484_v8 = vld [vmem:[%s2377_s4 + $0xb8] sm:$0xff] }
  0x22   :  { %1486 = vmatmul.mubr.bf16.vlgmr.msra.gmra.mrb[0].mxu0 %v1577_v9  ;;  %v485_v9 = vld [vmem:[%s2377_s4 + $0xc0] sm:$0xff] }
  0x23   :  { %1489 = vmatprep.mubr.bf16.mxu0 %v1578_v10  ;;  %530 = vperm.xlu1 %1566, %v468_v44   ;;  %v486_v10 = vld [vmem:[%s2377_s4 + $0xc8] sm:$0xff] }
  0x27   :  { %535 = vperm.xlu1 %1566, %v469_v49  }
  0x2a   :  { %1490 = vmatmul.mubr.bf16.gmra.mrb[4].mxu0 %v1579_v11  ;;  %v487_v11 = vld [vmem:[%s2377_s4 + $0xd0] sm:$0xff] }
  0x2b   :  { %1493 = vmatprep.mubr.bf16.mxu0 %v1580_v12  ;;  %540 = vperm.xlu1 %1566, %v470_v52   ;;  %v488_v12 = vld [vmem:[%s2377_s4 + $0xd8] sm:$0xff] }
  0x2f   :  { %545 = vperm.xlu1 %1566, %v471_v53  }
  0x32   :  { %1494 = vmatmul.mubr.bf16.gmra.mrb[8].mxu0 %v1581_v13  ;;  %v490_v13 = vld [vmem:[%s2377_s4 + $0xe8] sm:$0xff] }
  0x33   :  { %1497 = vmatprep.mubr.bf16.mxu0 %v1582_v14  ;;  %550 = vperm.xlu1 %1566, %v472_v55   ;;  %v492_v14 = vld [vmem:[%s2377_s4 + $0xf8] sm:$0xff] }
  0x34   :  { %v1147_v55 = vld [vmem:[%s2379_s5 + $0xf8] sm:$0xff] }
  0x37   :  { %555 = vperm.xlu1 %1566, %v473_v57  }
  0x3a   :  { %1498 = vmatmul.mubr.bf16.gmra.mrb[12].mxu0 %v1583_v15  ;;  %v1117_v15 = vld [vmem:[%s2379_s5 + $0x8] sm:$0xff] }
  0x3b   :  { %560 = vperm.xlu1 %1566, %v474_v60  }
  0x3f   :  { %565 = vperm.xlu1 %1566, %v475_v61  }
  0x43   :  { %570 = vperm.xlu1 %1566, %v476_v63  }
  0x47   :  { %580 = vperm.xlu1 %1566, %v478_v1  }
  0x4b   :  { %585 = vperm.xlu1 %1566, %v479_v3   ;;  %v477_v3 = vld [vmem:[%s2377_s4 + $0x80] sm:$0xff] }
  0x4f   :  { %590 = vperm.xlu1 %1566, %v480_v4  }
  0x53   :  { %595 = vperm.xlu1 %1566, %v481_v5  }
  0x57   :  { %600 = vperm.xlu1 %1566, %v482_v6  }
  0x5b   :  { %605 = vperm.xlu1 %1566, %v483_v7   ;;  %v12_v7 = vstv %s2381_s6 }
  0x5c   :  { %13 = vst [vmem:[#allocation2] sm:$0x1] %v12_v7  ;;  %v1130_v7 = vld [vmem:[%s2379_s5 + $0x70] sm:$0xff] }
  0x5f   :  { %610 = vperm.xlu1 %1566, %v484_v8  }
  0x63   :  { %615 = vperm.xlu1 %1566, %v485_v9   ;;  %v489_v9 = vld [vmem:[%s2377_s4 + $0xe0] sm:$0xff] }
  0x67   :  { %620 = vperm.xlu1 %1566, %v486_v10  }
  0x6b   :  { %625 = vperm.xlu1 %1566, %v487_v11  }
  0x6f   :  { %630 = vperm.xlu1 %1566, %v488_v12  }
  0x73   :  { %640 = vperm.xlu1 %1566, %v490_v13  }
  0x77   :  { %650 = vperm.xlu1 %1566, %v492_v14  }
  0x7b   :  { %1155 = vperm.xlu1 %1566, %v1117_v15  }
  0x7f   :  { %1165 = vperm.xlu1 %1566, %v1119_v17  }
  0x83   :  { %1175 = vperm.xlu1 %1566, %v1121_v18   ;;  %v491_v18 = vld [vmem:[%s2377_s4 + $0xf0] sm:$0xff] }
  0xf5   :  { %v1487_v20 = vpop.f32.mrb[0].mxu0 }
  0xf6   :  { %v198_v21 = vpop.f32.mrb[1].mxu0  ;;  %v207_v30 = vadd.f32 %v1487_v20, %v1703_v19 }
  0xf7   :  { %v1488_v22 = vpop.f32.mrb[2].mxu0  ;;  %v199_v23 = vadd.f32 %v1703_v19, %v198_v21  ;;  %v1127_v21 = vld [vmem:[%s2379_s5 + $0x58] sm:$0xff] }
  0xf8   :  { %v201_v24 = vpop.f32.mrb[3].mxu0  ;;  %v210_v34 = vadd.f32 %v1488_v22, %v1703_v19  ;;  %v1129_v22 = vld [vmem:[%s2379_s5 + $0x68] sm:$0xff] }
  0xf9   :  { %261 = vxpose.xlu0.b32.start [1/16] %v199_v23, 128  ;;  %v202_v26 = vadd.f32 %v1703_v19, %v201_v24  ;;  %v1584_v24 = vld [vmem:[%s2380_s3] sm:$0xff]  }
  0xfa   :  { %1517 = vmatprep.mubr.bf16.mxu0 %v1584_v24 }
  0xfd   :  { %262 = vxpose.xlu0.b32.cont [2/16] %v202_v26, 128  ;;  %v1491_v27 = vpop.f32.mrb[4].mxu0 }
  0xfe   :  { %v214_v29 = vpop.f32.mrb[5].mxu0  ;;  %v223_v46 = vadd.f32 %v1491_v27, %v1703_v19  ;;  %v1131_v27 = vld [vmem:[%s2379_s5 + $0x78] sm:$0xff] }
  0xff   :  { %v1492_v31 = vpop.f32.mrb[6].mxu0  ;;  %v215_v35 = vadd.f32 %v1703_v19, %v214_v29 }
 0x100   :  { %v217_v32 = vpop.f32.mrb[7].mxu0  ;;  %v226_v50 = vadd.f32 %v1492_v31, %v1703_v19 }
 0x101   :  { %263 = vxpose.xlu0.b32.cont [3/16] %v207_v30, 128  ;;  %v218_v42 = vadd.f32 %v1703_v19, %v217_v32  ;;  %v1135_v30 = vld [vmem:[%s2379_s5 + $0x98] sm:$0xff]  ;;  %v1137_v32 = vld [vmem:[%s2379_s5 + $0xa8] sm:$0xff] }
 0x105   :  { %264 = vxpose.xlu0.b32.cont [4/16] %v210_v34, 128  ;;  %v1495_v36 = vpop.f32.mrb[8].mxu0  ;;  %v1139_v34 = vld [vmem:[%s2379_s5 + $0xb8] sm:$0xff] }
 0x106   :  { %v230_v38 = vpop.f32.mrb[9].mxu0  ;;  %v239_v56 = vadd.f32 %v1495_v36, %v1703_v19  ;;  %v1141_v36 = vld [vmem:[%s2379_s5 + $0xc8] sm:$0xff] }
 0x107   :  { %v1496_v39 = vpop.f32.mrb[10].mxu0  ;;  %v231_v51 = vadd.f32 %v1703_v19, %v230_v38 }
 0x108   :  { %v233_v40 = vpop.f32.mrb[11].mxu0  ;;  %v242_v58 = vadd.f32 %v1496_v39, %v1703_v19  ;;  %v1143_v39 = vld [vmem:[%s2379_s5 + $0xd8] sm:$0xff] }
 0x109   :  { %265 = vxpose.xlu0.b32.cont [5/16] %v215_v35, 128  ;;  %v234_v54 = vadd.f32 %v1703_v19, %v233_v40 }
 0x10d   :  { %266 = vxpose.xlu0.b32.cont [6/16] %v218_v42, 128  ;;  %v1499_v43 = vpop.f32.mrb[12].mxu0 }
 0x10e   :  { %v246_v45 = vpop.f32.mrb[13].mxu0  ;;  %v255_v0 = vadd.f32 %v1499_v43, %v1703_v19 }
 0x10f   :  { %v1500_v47 = vpop.f32.mrb[14].mxu0  ;;  %v247_v59 = vadd.f32 %v1703_v19, %v246_v45 }
 0x110   :  { %v249_v48 = vpop.f32.mrb[15].mxu0  ;;  %v258_v2 = vadd.f32 %v1500_v47, %v1703_v19  ;;  %v1145_v47 = vld [vmem:[%s2379_s5 + $0xe8] sm:$0xff] }
 0x111   :  { %267 = vxpose.xlu0.b32.cont [7/16] %v223_v46, 128  ;;  %v250_v62 = vadd.f32 %v1703_v19, %v249_v48  ;;  %v1125_v19 = vld [vmem:[%s2379_s5 + $0x48] sm:$0xff] }
 0x115   :  { %268 = vxpose.xlu0.b32.cont [8/16] %v226_v50, 128 }
 0x119   :  { %269 = vxpose.xlu0.b32.cont [9/16] %v231_v51, 128 }
 0x11d   :  { %270 = vxpose.xlu0.b32.cont [10/16] %v234_v54, 128 }
 0x121   :  { %271 = vxpose.xlu0.b32.cont [11/16] %v239_v56, 128 }
 0x125   :  { %272 = vxpose.xlu0.b32.cont [12/16] %v242_v58, 128 }
 0x129   :  { %273 = vxpose.xlu0.b32.cont [13/16] %v247_v59, 128 }
 0x12d   :  { %274 = vxpose.xlu0.b32.cont [14/16] %v250_v62, 128 }
 0x131   :  { %275 = vxpose.xlu0.b32.cont [15/16] %v255_v0, 128 }
 0x135   :  { %276 = vxpose.xlu0.b32.end [16/16] %v258_v2, 128 }
 0x15e   :  { %1567 = vset.pattern.permute.xlu0 %v1604_v16  ;;  %v1123_v16 = vld [vmem:[%s2379_s5 + $0x38] sm:$0xff] }
 0x15f   :  { %1185 = vperm.xlu1 %1566, %v1123_v16   ;;  %575 = vperm.xlu0 %1567, %v477_v3  }
 0x163   :  { %1195 = vperm.xlu1 %1566, %v1125_v19   ;;  %635 = vperm.xlu0 %1567, %v489_v9   ;;  %v1132_v9 = vld [vmem:[%s2379_s5 + $0x80] sm:$0xff] }
 0x167   :  { %1205 = vperm.xlu1 %1566, %v1127_v21   ;;  %645 = vperm.xlu0 %1567, %v491_v18  }
 0x16b   :  { %1215 = vperm.xlu1 %1566, %v1129_v22  }
 0x16f   :  { %1225 = vperm.xlu1 %1566, %v1131_v27  }
 0x173   :  { %1235 = vperm.xlu1 %1566, %v1133_v28   ;;  %v1116_v28 = vld [vmem:[%s2379_s5] sm:$0xff] }
 0x174   :  { %1150 = vperm.xlu0 %1567, %v1116_v28  }
 0x177   :  { %1245 = vperm.xlu1 %1566, %v1135_v30  }
 0x179   :  { %v1818_v20 = vpop.trf.xlu0 }
 0x17a   :  { %v315_v41 = vmul.f32 %v1818_v20, %v1818_v20 }
 0x17b   :  { %1255 = vperm.xlu1 %1566, %v1137_v32  }
 0x17d   :  { %v1826_v23 = vpop.trf.xlu0 }
 0x17e   :  { %v316_v38 = vmul.f32 %v1826_v23, %v1826_v23  ;;  %v293_v42 = vadd.f32 %v1826_v23, %v1818_v20 }
 0x17f   :  { %1265 = vperm.xlu1 %1566, %v1139_v34  }
 0x180   :  { %v331_v44 = vadd.f32 %v316_v38, %v315_v41  ;;  %v1118_v41 = vld [vmem:[%s2379_s5 + $0x10] sm:$0xff] }
 0x181   :  { %v1834_v26 = vpop.trf.xlu0  ;;  %1160 = vperm.xlu0 %1567, %v1118_v41  }
 0x182   :  { %v317_v43 = vmul.f32 %v1834_v26, %v1834_v26  ;;  %v294_v45 = vadd.f32 %v293_v42, %v1834_v26 }
 0x183   :  { %1275 = vperm.xlu1 %1566, %v1141_v36  }
 0x184   :  { %v332_v49 = vadd.f32 %v331_v44, %v317_v43 }
 0x185   :  { %v1842_v29 = vpop.trf.xlu0 }
 0x186   :  { %v318_v46 = vmul.f32 %v1842_v29, %v1842_v29  ;;  %v295_v50 = vadd.f32 %v294_v45, %v1842_v29 }
 0x187   :  { %1285 = vperm.xlu1 %1566, %v1143_v39  }
 0x188   :  { %v333_v52 = vadd.f32 %v332_v49, %v318_v46 }
 0x189   :  { %v1847_v31 = vpop.trf.xlu0 }
 0x18a   :  { %v319_v51 = vmul.f32 %v1847_v31, %v1847_v31  ;;  %v296_v53 = vadd.f32 %v295_v50, %v1847_v31 }
 0x18b   :  { %1295 = vperm.xlu1 %1566, %v1145_v47   ;;  %v1120_v47 = vld [vmem:[%s2379_s5 + $0x20] sm:$0xff] }
 0x18c   :  { %v334_v57 = vadd.f32 %v333_v52, %v319_v51  ;;  %1170 = vperm.xlu0 %1567, %v1120_v47  }
 0x18d   :  { %v1852_v33 = vpop.trf.xlu0 }
 0x18e   :  { %v320_v54 = vmul.f32 %v1852_v33, %v1852_v33  ;;  %v297_v58 = vadd.f32 %v296_v53, %v1852_v33  ;;  %v1122_v53 = vld [vmem:[%s2379_s5 + $0x30] sm:$0xff] }
 0x18f   :  { %1305 = vperm.xlu1 %1566, %v1147_v55  }
 0x190   :  { %v335_v60 = vadd.f32 %v334_v57, %v320_v54  ;;  %1180 = vperm.xlu0 %1567, %v1122_v53  }
 0x191   :  { %v1857_v35 = vpop.trf.xlu0 }
 0x192   :  { %v321_v59 = vmul.f32 %v1857_v35, %v1857_v35  ;;  %v298_v61 = vadd.f32 %v297_v58, %v1857_v35 }
 0x194   :  { %v336_v0 = vadd.f32 %v335_v60, %v321_v59  ;;  %v1124_v59 = vld [vmem:[%s2379_s5 + $0x40] sm:$0xff] }
 0x195   :  { %v1862_v37 = vpop.trf.xlu0  ;;  %1190 = vperm.xlu0 %1567, %v1124_v59  }
 0x196   :  { %v322_v62 = vmul.f32 %v1862_v37, %v1862_v37  ;;  %v299_v1 = vadd.f32 %v298_v61, %v1862_v37 }
 0x198   :  { %v337_v4 = vadd.f32 %v336_v0, %v322_v62 }
 0x199   :  { %v1869_v40 = vpop.trf.xlu0 }
 0x19a   :  { %v323_v2 = vmul.f32 %v1869_v40, %v1869_v40  ;;  %v300_v5 = vadd.f32 %v299_v1, %v1869_v40  ;;  %v1126_v1 = vld [vmem:[%s2379_s5 + $0x50] sm:$0xff] }
 0x19b   :  { %1200 = vperm.xlu0 %1567, %v1126_v1  }
 0x19c   :  { %v338_v10 = vadd.f32 %v337_v4, %v323_v2 }
 0x19d   :  { %v1883_v48 = vpop.trf.xlu0 }
 0x19e   :  { %v324_v6 = vmul.f32 %v1883_v48, %v1883_v48  ;;  %v301_v11 = vadd.f32 %v300_v5, %v1883_v48  ;;  %v1128_v5 = vld [vmem:[%s2379_s5 + $0x60] sm:$0xff] }
 0x19f   :  { %1210 = vperm.xlu0 %1567, %v1128_v5  }
 0x1a0   :  { %v339_v13 = vadd.f32 %v338_v10, %v324_v6 }
 0x1a1   :  { %v1894_v56 = vpop.trf.xlu0 }
 0x1a2   :  { %v325_v12 = vmul.f32 %v1894_v56, %v1894_v56  ;;  %v302_v14 = vadd.f32 %v301_v11, %v1894_v56 }
 0x1a3   :  { %1220 = vperm.xlu0 %1567, %v1130_v7   ;;  %v1140_v7 = vld [vmem:[%s2379_s5 + $0xc0] sm:$0xff] }
 0x1a4   :  { %v340_v16 = vadd.f32 %v339_v13, %v325_v12 }
 0x1a5   :  { %v1902_v63 = vpop.trf.xlu0 }
 0x1a6   :  { %v326_v15 = vmul.f32 %v1902_v63, %v1902_v63  ;;  %v303_v19 = vadd.f32 %v302_v14, %v1902_v63 }
 0x1a7   :  { %1230 = vperm.xlu0 %1567, %v1132_v9  }
 0x1a8   :  { %v341_v22 = vadd.f32 %v340_v16, %v326_v15  ;;  %v1134_v15 = vld [vmem:[%s2379_s5 + $0x90] sm:$0xff] }
 0x1a9   :  { %v1916_v8 = vpop.trf.xlu0 }
 0x1aa   :  { %v327_v21 = vmul.f32 %v1916_v8, %v1916_v8  ;;  %v304_v24 = vadd.f32 %v303_v19, %v1916_v8 }
 0x1ab   :  { %1240 = vperm.xlu0 %1567, %v1134_v15  }
 0x1ac   :  { %v342_v30 = vadd.f32 %v341_v22, %v327_v21 }
 0x1ad   :  { %v1927_v17 = vpop.trf.xlu0 }
 0x1ae   :  { %v328_v25 = vmul.f32 %v1927_v17, %v1927_v17  ;;  %v305_v32 = vadd.f32 %v304_v24, %v1927_v17 }
 0x1b0   :  { %v343_v36 = vadd.f32 %v342_v30, %v328_v25 }
 0x1b1   :  { %v1938_v27 = vpop.trf.xlu0 }
 0x1b2   :  { %v329_v34 = vmul.f32 %v1938_v27, %v1938_v27  ;;  %v306_v38 = vadd.f32 %v305_v32, %v1938_v27 }
 0x1b4   :  { %v344_v42 = vadd.f32 %v343_v36, %v329_v34 }
 0x1b5   :  { %v1947_v39 = vpop.trf.xlu0 }
 0x1b6   :  { %v307_v43 = vadd.f32 %v306_v38, %v1947_v39  ;;  %v330_v44 = vmul.f32 %v1947_v39, %v1947_v39 }
 0x1b8   :  { %v308_v45 = vrot.slane %v307_v43, 4  ;;  %v345_v46 = vadd.f32 %v344_v42, %v330_v44 }
 0x1ba   :  { %v309_v49 = vadd.f32 %v308_v45, %v307_v43  ;;  %v346_v50 = vrot.slane %v345_v46, 4 }
 0x1bc   :  { %v310_v51 = vrot.slane %v309_v49, 2  ;;  %v347_v52 = vadd.f32 %v346_v50, %v345_v46 }
 0x1be   :  { %v311_v54 = vadd.f32 %v310_v51, %v309_v49  ;;  %v348_v55 = vrot.slane %v347_v52, 2 }
 0x1c0   :  { %v312_v57 = vrot.slane %v311_v54, 1  ;;  %v349_v58 = vadd.f32 %v348_v55, %v347_v52 }
 0x1c2   :  { %v313_v60 = vadd.f32 %v312_v57, %v311_v54  ;;  %v350_v61 = vrot.slane %v349_v58, 1 }
 0x1c4   :  { %v1964_v62 = vmul.f32 0.01, %v313_v60  ;;  %v351_v0 = vadd.f32 %v350_v61, %v349_v58  ;;  %v1138_v60 = vld [vmem:[%s2379_s5 + $0xb0] sm:$0xff] }
 0x1c6   :  { %v352_v2 = vmul.f32 0.01, %v351_v0  ;;  %v353_v3 = vmul.f32 %v1964_v62, %v1964_v62  ;;  %v355_v10 = vsub.f32 %v1818_v20, %v1964_v62  ;;  %v356_v11 = vsub.f32 %v1826_v23, %v1964_v62 }
 0x1c7   :  { %v357_v12 = vsub.f32 %v1834_v26, %v1964_v62  ;;  %v358_v13 = vsub.f32 %v1842_v29, %v1964_v62  ;;  %v359_v14 = vsub.f32 %v1847_v31, %v1964_v62  ;;  %v360_v20 = vsub.f32 %v1852_v33, %v1964_v62 }
 0x1c8   :  { %v354_v4 = vsub.f32 %v352_v2, %v353_v3  ;;  %v361_v23 = vsub.f32 %v1857_v35, %v1964_v62  ;;  %v362_v26 = vsub.f32 %v1862_v37, %v1964_v62  ;;  %v363_v29 = vsub.f32 %v1869_v40, %v1964_v62 }
 0x1c9   :  { %v364_v21 = vsub.f32 %v1883_v48, %v1964_v62  ;;  %v365_v28 = vsub.f32 %v1894_v56, %v1964_v62  ;;  %v1136_v48 = vld [vmem:[%s2379_s5 + $0xa0] sm:$0xff]  ;;  %v366_v43 = vsub.f32 %v1902_v63, %v1964_v62  ;;  %v370_v15 = vsub.f32 %v1947_v39, %v1964_v62 }
 0x1ca   :  { %v371_v6 = vadd.f32 1e-05, %v354_v4  ;;  %1250 = vperm.xlu0 %1567, %v1136_v48   ;;  %v1592_v48 = vld [vmem:[%s2380_s3 + $0x40] sm:$0xff]  }
 0x1cc   :  { %1600 = vrsqrt.f32 %v371_v6 }
 0x1ce   :  { %1260 = vperm.xlu0 %1567, %v1138_v60  }
 0x1d2   :  { %1270 = vperm.xlu0 %1567, %v1140_v7  }
 0x1d6   :  { %v1993_v18 = vpop.eup %1600 }
 0x1d7   :  { %v373_v31 = vmul.f32 %v1993_v18, %v355_v10  ;;  %v374_v16 = vmul.f32 %v1993_v18, %v356_v11  ;;  %v375_v19 = vmul.f32 %v1993_v18, %v357_v12  ;;  %v376_v33 = vmul.f32 %v1993_v18, %v358_v13 }
 0x1d8   :  { %v377_v22 = vmul.f32 %v1993_v18, %v359_v14  ;;  %v378_v35 = vmul.f32 %v1993_v18, %v360_v20  ;;  %v379_v37 = vmul.f32 %v1993_v18, %v361_v23  ;;  %v380_v25 = vmul.f32 %v1993_v18, %v362_v26  ;;  %v1142_v14 = vld [vmem:[%s2379_s5 + $0xd0] sm:$0xff] }
 0x1d9   :  { %v389_v24 = vmul.f32 0.2, %v373_v31  ;;  %v390_v40 = vmul.f32 0.2, %v374_v16  ;;  %v391_v30 = vmul.f32 0.2, %v375_v19  ;;  %v381_v36 = vmul.f32 %v1993_v18, %v363_v29  ;;  %1280 = vperm.xlu0 %1567, %v1142_v14  }
 0x1da   :  { %v392_v32 = vmul.f32 0.2, %v376_v33  ;;  %v393_v34 = vmul.f32 0.2, %v377_v22  ;;  %v394_v42 = vmul.f32 0.2, %v378_v35  ;;  %v382_v51 = vmul.f32 %v1993_v18, %v364_v21 }
 0x1db   :  { %v405_v38 = vmax.f32 %v373_v31, %v389_v24  ;;  %v406_v41 = vmax.f32 %v374_v16, %v390_v40  ;;  %v407_v44 = vmax.f32 %v375_v19, %v391_v30  ;;  %v395_v47 = vmul.f32 0.2, %v379_v37  ;;  %v1144_v29 = vld [vmem:[%s2379_s5 + $0xe0] sm:$0xff]  ;;  %v1588_v24 = vld [vmem:[%s2380_s3 + $0x10] sm:$0xff]   ;;  %v1593_v30 = vld [vmem:[%s2380_s3 + $0x48] sm:$0xff]  }
 0x1dc   :  { %v408_v45 = vmax.f32 %v376_v33, %v392_v32  ;;  %v409_v46 = vmax.f32 %v377_v22, %v393_v34  ;;  %v410_v49 = vmax.f32 %v378_v35, %v394_v42  ;;  %v396_v50 = vmul.f32 0.2, %v380_v25  ;;  %v1380_v33 = vld [vmem:[#allocation2] sm:$0x1]  ;;  %v1586_v35 = vld [vmem:[%s2380_s3 + $0x8] sm:$0xff]   ;;  %v1589_v40 = vld [vmem:[%s2380_s3 + $0x30] sm:$0xff]  }
 0x1dd   :  { %v453_v56 = vpack.c.bf16 %v406_v41, %v405_v38  ;;  %v411_v53 = vmax.f32 %v379_v37, %v395_v47  ;;  %v397_v54 = vmul.f32 0.2, %v381_v36  ;;  %v383_v55 = vmul.f32 %v1993_v18, %v365_v28  ;;  %1290 = vperm.xlu0 %1567, %v1144_v29   ;;  %v1587_v37 = vld [vmem:[%s2380_s3 + $0x28] sm:$0xff]   ;;  %v1591_v28 = vld [vmem:[%s2380_s3 + $0x38] sm:$0xff]   ;;  %v1594_v32 = vld [vmem:[%s2380_s3 + $0x50] sm:$0xff]  }
 0x1de   :  { %v454_v52 = vpack.c.bf16 %v408_v45, %v407_v44  ;;  %v455_v57 = vpack.c.bf16 %v410_v49, %v409_v46  ;;  %v412_v58 = vmax.f32 %v380_v25, %v396_v50  ;;  %v398_v63 = vmul.f32 0.2, %v382_v51  ;;  %v1590_v25 = vld [vmem:[%s2380_s3 + $0x18] sm:$0xff]   ;;  %v1597_v38 = vld [vmem:[%s2380_s3 + $0x68] sm:$0xff]   ;;  %v1598_v41 = vld [vmem:[%s2380_s3 + $0x70] sm:$0xff]  }
 0x1df   :  { %1501 = vmatprep.subr.bf16.mxu0 %v453_v56  ;;  %1549 = vmatprep.subr.bf16.mxu1 %v453_v56  ;;  %v384_v59 = vmul.f32 %v1993_v18, %v366_v43  ;;  %v413_v61 = vmax.f32 %v381_v36, %v397_v54  ;;  %v399_v0 = vmul.f32 0.2, %v383_v55  ;;  %v367_v10 = vsub.f32 %v1916_v8, %v1964_v62  ;;  %v1595_v34 = vld [vmem:[%s2380_s3 + $0x58] sm:$0xff]   ;;  %v1596_v36 = vld [vmem:[%s2380_s3 + $0x60] sm:$0xff]   ;;  %v496_v43 = vpop.permute.xlu1 %495 }
 0x1e0   :  { %1502 = vmatpush3.bf16.msra.mxu0 %v453_v56  ;;  %1557 = vmatpush3.bf16.msra.mxu1 %v453_v56  ;;  %v456_v1 = vpack.c.bf16 %v412_v58, %v411_v53  ;;  %v414_v2 = vmax.f32 %v382_v51, %v398_v63  ;;  %v368_v11 = vsub.f32 %v1927_v17, %v1964_v62  ;;  %v1599_v42 = vld [vmem:[%s2380_s3 + $0x78] sm:$0xff]  }
 0x1e1   :  { %1503 = vmatprep.subr.bf16.mxu0 %v454_v52  ;;  %1550 = vmatprep.subr.bf16.mxu1 %v454_v52  ;;  %v400_v3 = vmul.f32 0.2, %v384_v59  ;;  %v415_v4 = vmax.f32 %v383_v55, %v399_v0  ;;  %v385_v12 = vmul.f32 %v1993_v18, %v367_v10  ;;  %v369_v8 = vsub.f32 %v1938_v27, %v1964_v62  ;;  %v1146_v62 = vld [vmem:[%s2379_s5 + $0xf0] sm:$0xff] }
 0x1e2   :  { %v457_v5 = vpack.c.bf16 %v414_v2, %v413_v61  ;;  %v386_v13 = vmul.f32 %v1993_v18, %v368_v11  ;;  %v388_v17 = vmul.f32 %v1993_v18, %v370_v15  ;;  %1300 = vperm.xlu0 %1567, %v1146_v62  }
 0x1e3   :  { %v416_v6 = vmax.f32 %v384_v59, %v400_v3  ;;  %v401_v20 = vmul.f32 0.2, %v385_v12  ;;  %v387_v26 = vmul.f32 %v1993_v18, %v369_v8  ;;  %v501_v44 = vpop.permute.xlu1 %500 }
 0x1e4   :  { %1504 = vmatpush3.bf16.msra.mxu0 %v454_v52  ;;  %1558 = vmatpush3.bf16.msra.mxu1 %v454_v52  ;;  %v402_v23 = vmul.f32 0.2, %v386_v13  ;;  %v404_v39 = vmul.f32 0.2, %v388_v17 }
 0x1e5   :  { %1505 = vmatprep.subr.bf16.mxu0 %v455_v57  ;;  %1551 = vmatprep.subr.bf16.mxu1 %v455_v57  ;;  %v458_v9 = vpack.c.bf16 %v416_v6, %v415_v4  ;;  %v417_v31 = vmax.f32 %v385_v12, %v401_v20  ;;  %v403_v27 = vmul.f32 0.2, %v387_v26 }
 0x1e6   :  { %v418_v16 = vmax.f32 %v386_v13, %v402_v23  ;;  %v420_v18 = vmax.f32 %v388_v17, %v404_v39  ;;  %1383 = vperm.xlu0 %1567, %v1380_v33  }
 0x1e7   :  { %v419_v21 = vmax.f32 %v387_v26, %v403_v27  ;;  %v506_v45 = vpop.permute.xlu1 %505 }
 0x1e8   :  { %1506 = vmatpush3.bf16.msra.mxu0 %v455_v57  ;;  %1559 = vmatpush3.bf16.msra.mxu1 %v455_v57  ;;  %v459_v19 = vpack.c.bf16 %v418_v16, %v417_v31 }
 0x1e9   :  { %1507 = vmatprep.subr.bf16.mxu0 %v456_v1  ;;  %1552 = vmatprep.subr.bf16.mxu1 %v456_v1  ;;  %v460_v22 = vpack.c.bf16 %v420_v18, %v419_v21 }
 0x1eb   :  { %v511_v46 = vpop.permute.xlu1 %510 }
 0x1ec   :  { %1508 = vmatpush3.bf16.msra.mxu0 %v456_v1  ;;  %1560 = vmatpush3.bf16.msra.mxu1 %v456_v1 }
 0x1ed   :  { %1509 = vmatprep.subr.bf16.mxu0 %v457_v5  ;;  %1553 = vmatprep.subr.bf16.mxu1 %v457_v5 }
 0x1ef   :  { %v516_v47 = vpop.permute.xlu1 %515 }
 0x1f0   :  { %1510 = vmatpush3.bf16.msra.mxu0 %v457_v5  ;;  %1561 = vmatpush3.bf16.msra.mxu1 %v457_v5 }
 0x1f1   :  { %1511 = vmatprep.subr.bf16.mxu0 %v458_v9  ;;  %1554 = vmatprep.subr.bf16.mxu1 %v458_v9 }
 0x1f3   :  { %v521_v56 = vpop.permute.xlu1 %520 }
 0x1f4   :  { %1512 = vmatpush3.bf16.msra.mxu0 %v458_v9  ;;  %1562 = vmatpush3.bf16.msra.mxu1 %v458_v9 }
 0x1f5   :  { %1513 = vmatprep.subr.bf16.mxu0 %v459_v19  ;;  %1555 = vmatprep.subr.bf16.mxu1 %v459_v19 }
 0x1f7   :  { %v526_v49 = vpop.permute.xlu1 %525 }
 0x1f8   :  { %1514 = vmatpush3.bf16.msra.mxu0 %v459_v19  ;;  %1563 = vmatpush3.bf16.msra.mxu1 %v459_v19 }
 0x1f9   :  { %1515 = vmatprep.subr.bf16.mxu0 %v460_v22  ;;  %1556 = vmatprep.subr.bf16.mxu1 %v460_v22 }
 0x1fb   :  { %v531_v50 = vpop.permute.xlu1 %530 }
 0x1fc   :  { %1516 = vmatpush3.bf16.msra.mxu0 %v460_v22  ;;  %1564 = vmatpush3.bf16.msra.mxu1 %v460_v22 }
 0x1ff   :  { %1518 = vmatmul.mubr.bf16.vlgmr.msra.gmra.mrb[16].mxu0 %v1586_v35  ;;  %1526 = vmatmul.mubr.bf16.vlgmr.msra.gmra.mrb[0].mxu1 %v1587_v37  ;;  %v536_v51 = vpop.permute.xlu1 %535 }
 0x200   :  { %1521 = vmatprep.mubr.bf16.mxu0 %v1588_v24  ;;  %1529 = vmatprep.mubr.bf16.mxu1 %v1589_v40 }
 0x203   :  { %v541_v52 = vpop.permute.xlu1 %540 }
 0x207   :  { %1522 = vmatmul.mubr.bf16.gmra.mrb[20].mxu0 %v1590_v25  ;;  %1530 = vmatmul.mubr.bf16.gmra.mrb[4].mxu1 %v1591_v28  ;;  %v2093_v53 = vpop.permute.xlu1 %545 }
 0x208   :  { %1533 = vmatprep.mubr.bf16.mxu1 %v1592_v48 }
 0x20b   :  { %v2095_v54 = vpop.permute.xlu1 %550 }
 0x20f   :  { %1534 = vmatmul.mubr.bf16.gmra.mrb[8].mxu1 %v1593_v30  ;;  %v2097_v55 = vpop.permute.xlu1 %555 }
 0x210   :  { %1537 = vmatprep.mubr.bf16.mxu1 %v1594_v32 }
 0x213   :  { %v2099_v57 = vpop.permute.xlu1 %560 }
 0x217   :  { %1538 = vmatmul.mubr.bf16.gmra.mrb[12].mxu1 %v1595_v34  ;;  %v2101_v58 = vpop.permute.xlu1 %565 }
 0x218   :  { %1541 = vmatprep.mubr.bf16.mxu1 %v1596_v36 }
 0x21b   :  { %v2103_v63 = vpop.permute.xlu1 %570 }
 0x21f   :  { %1542 = vmatmul.mubr.bf16.gmra.mrb[16].mxu1 %v1597_v38  ;;  %v2105_v59 = vpop.permute.xlu1 %580 }
 0x220   :  { %1545 = vmatprep.mubr.bf16.mxu1 %v1598_v41 }
 0x223   :  { %v2107_v60 = vpop.permute.xlu1 %585 }
 0x227   :  { %1546 = vmatmul.mubr.bf16.gmra.mrb[20].mxu1 %v1599_v42  ;;  %v2109_v61 = vpop.permute.xlu1 %590 }
 0x22b   :  { %v2125_v8 = vpop.permute.xlu1 %595 }
 0x22f   :  { %v2142_v28 = vpop.permute.xlu1 %600 }
 0x2d2   :  { %v1519_v0 = vpop.f32.mrb[16].mxu0  ;;  %v1527_v1 = vpop.f32.mrb[0].mxu1 }
 0x2d3   :  { %v783_v2 = vpop.f32.mrb[17].mxu0  ;;  %v815_v3 = vpop.f32.mrb[1].mxu1  ;;  %v2113_v10 = vadd.f32 %v1519_v0, %v506_v45 }
 0x2d4   :  { %v2111_v4 = vadd.f32 %v783_v2, %v496_v43  ;;  %v1520_v5 = vpop.f32.mrb[18].mxu0  ;;  %v1528_v6 = vpop.f32.mrb[2].mxu1  ;;  %v2149_v38 = vadd.f32 %v815_v3, %v536_v51  ;;  %v2162_v51 = vadd.f32 %v1527_v1, %v2093_v53 }
 0x2d5   :  { %v786_v7 = vpop.f32.mrb[19].mxu0  ;;  %v818_v9 = vpop.f32.mrb[3].mxu1  ;;  %v2119_v13 = vadd.f32 %v1520_v5, %v511_v46  ;;  %v950_v17 = vmul.f32 %v2113_v10, %v2113_v10 }
 0x2d6   :  { %v2115_v11 = vadd.f32 %v786_v7, %v501_v44  ;;  %v948_v12 = vmul.f32 %v2111_v4, %v2111_v4  ;;  %v2154_v46 = vadd.f32 %v818_v9, %v541_v52  ;;  %v2159_v0 = vpop.permute.xlu1 %605  ;;  %v956_v2 = vmul.f32 %v2149_v38, %v2149_v38 }
 0x2d7   :  { %v951_v16 = vmul.f32 %v2119_v13, %v2119_v13  ;;  %v2168_v52 = vadd.f32 %v1528_v6, %v2095_v54  ;;  %v958_v53 = vmul.f32 %v2162_v51, %v2162_v51 }
 0x2d8   :  { %v910_v14 = vadd.f32 %v2115_v11, %v2111_v4  ;;  %v949_v15 = vmul.f32 %v2115_v11, %v2115_v11  ;;  %v957_v7 = vmul.f32 %v2154_v46, %v2154_v46 }
 0x2d9   :  { %v959_v6 = vmul.f32 %v2168_v52, %v2168_v52 }
 0x2da   :  { %v911_v20 = vadd.f32 %v910_v14, %v2113_v10  ;;  %v980_v23 = vadd.f32 %v949_v15, %v948_v12  ;;  %v1523_v26 = vpop.f32.mrb[20].mxu0  ;;  %v1531_v29 = vpop.f32.mrb[4].mxu1 }
 0x2db   :  { %v799_v39 = vpop.f32.mrb[21].mxu0  ;;  %v831_v31 = vpop.f32.mrb[5].mxu1  ;;  %v2138_v40 = vadd.f32 %v1523_v26, %v526_v49 }
 0x2dc   :  { %v981_v27 = vadd.f32 %v980_v23, %v950_v17  ;;  %v2132_v62 = vadd.f32 %v799_v39, %v516_v47  ;;  %v912_v18 = vadd.f32 %v911_v20, %v2119_v13  ;;  %v1524_v19 = vpop.f32.mrb[22].mxu0  ;;  %v1532_v21 = vpop.f32.mrb[6].mxu1  ;;  %v2176_v1 = vadd.f32 %v831_v31, %v2097_v55 }
 0x2dd   :  { %v802_v33 = vpop.f32.mrb[23].mxu0  ;;  %v834_v22 = vpop.f32.mrb[7].mxu1  ;;  %v2144_v30 = vadd.f32 %v1524_v19, %v531_v50  ;;  %v954_v41 = vmul.f32 %v2138_v40, %v2138_v40 }
 0x2de   :  { %v913_v35 = vadd.f32 %v912_v18, %v2132_v62  ;;  %v952_v37 = vmul.f32 %v2132_v62, %v2132_v62  ;;  %v982_v24 = vadd.f32 %v981_v27, %v951_v16  ;;  %v2140_v25 = vadd.f32 %v802_v33, %v521_v56  ;;  %v611_v23 = vpop.permute.xlu1 %610  ;;  %v576_v33 = vpop.permute.xlu0 %575 }
 0x2df   :  { %v955_v47 = vmul.f32 %v2144_v30, %v2144_v30  ;;  %v2182_v26 = vadd.f32 %v834_v22, %v2099_v57  ;;  %v2186_v18 = vadd.f32 %v1531_v29, %v2101_v58  ;;  %v960_v55 = vmul.f32 %v2176_v1, %v2176_v1 }
 0x2e0   :  { %v983_v48 = vadd.f32 %v982_v24, %v952_v37  ;;  %v914_v32 = vadd.f32 %v913_v35, %v2140_v25  ;;  %v953_v34 = vmul.f32 %v2140_v25, %v2140_v25  ;;  %v2192_v35 = vadd.f32 %v1532_v21, %v2103_v63 }
 0x2e1   :  { %v961_v22 = vmul.f32 %v2182_v26, %v2182_v26 }
 0x2e2   :  { %v1535_v36 = vpop.f32.mrb[8].mxu1  ;;  %v915_v42 = vadd.f32 %v914_v32, %v2138_v40  ;;  %v984_v43 = vadd.f32 %v983_v48, %v953_v34  ;;  %v616_v58 = vpop.permute.xlu1 %615  ;;  %v962_v48 = vmul.f32 %v2186_v18, %v2186_v18  ;;  %v963_v63 = vmul.f32 %v2192_v35, %v2192_v35 }
 0x2e3   :  { %v847_v44 = vpop.f32.mrb[9].mxu1 }
 0x2e4   :  { %v1536_v45 = vpop.f32.mrb[10].mxu1  ;;  %v916_v56 = vadd.f32 %v915_v42, %v2144_v30  ;;  %v985_v49 = vadd.f32 %v984_v43, %v954_v41  ;;  %v2197_v24 = vadd.f32 %v847_v44, %v576_v33 }
 0x2e5   :  { %v850_v50 = vpop.f32.mrb[11].mxu1 }
 0x2e6   :  { %v917_v3 = vadd.f32 %v916_v56, %v2149_v38  ;;  %v986_v5 = vadd.f32 %v985_v49, %v955_v47  ;;  %v964_v44 = vmul.f32 %v2197_v24, %v2197_v24  ;;  %v2208_v47 = vadd.f32 %v850_v50, %v2105_v59 }
 0x2e7   :  { %v2211_v49 = vadd.f32 %v1535_v36, %v2107_v60 }
 0x2e8   :  { %v987_v9 = vadd.f32 %v986_v5, %v956_v2  ;;  %v918_v12 = vadd.f32 %v917_v3, %v2154_v46  ;;  %v621_v5 = vpop.permute.xlu1 %620 }
 0x2e9   :  { %v966_v59 = vmul.f32 %v2211_v49, %v2211_v49 }
 0x2ea   :  { %v1539_v14 = vpop.f32.mrb[12].mxu1  ;;  %v919_v15 = vadd.f32 %v918_v12, %v2162_v51  ;;  %v988_v17 = vadd.f32 %v987_v9, %v957_v7  ;;  %v2215_v9 = vadd.f32 %v1536_v45, %v2109_v61 }
 0x2eb   :  { %v863_v20 = vpop.f32.mrb[13].mxu1 }
 0x2ec   :  { %v1540_v54 = vpop.f32.mrb[14].mxu1  ;;  %v920_v39 = vadd.f32 %v919_v15, %v2168_v52  ;;  %v989_v16 = vadd.f32 %v988_v17, %v958_v53  ;;  %v965_v53 = vmul.f32 %v2208_v47, %v2208_v47  ;;  %v2224_v50 = vadd.f32 %v863_v20, %v2125_v8 }
 0x2ed   :  { %v866_v27 = vpop.f32.mrb[15].mxu1  ;;  %v967_v61 = vmul.f32 %v2215_v9, %v2215_v9 }
 0x2ee   :  { %v921_v31 = vadd.f32 %v920_v39, %v2176_v1  ;;  %v990_v19 = vadd.f32 %v989_v16, %v959_v6  ;;  %v2230_v16 = vadd.f32 %v866_v27, %v2142_v28  ;;  %v968_v8 = vmul.f32 %v2224_v50, %v2224_v50 }
 0x2f0   :  { %v922_v57 = vadd.f32 %v921_v31, %v2182_v26  ;;  %v991_v37 = vadd.f32 %v990_v19, %v960_v55  ;;  %v626_v31 = vpop.permute.xlu1 %625  ;;  %v2233_v19 = vadd.f32 %v1539_v14, %v2159_v0  ;;  %v969_v28 = vmul.f32 %v2230_v16, %v2230_v16 }
 0x2f2   :  { %v1543_v29 = vpop.f32.mrb[16].mxu1  ;;  %v923_v32 = vadd.f32 %v922_v57, %v2186_v18  ;;  %v992_v34 = vadd.f32 %v991_v37, %v961_v22  ;;  %v2238_v22 = vadd.f32 %v1540_v54, %v611_v23  ;;  %v970_v27 = vmul.f32 %v2233_v19, %v2233_v19 }
 0x2f3   :  { %v879_v41 = vpop.f32.mrb[17].mxu1 }
 0x2f4   :  { %v1544_v21 = vpop.f32.mrb[18].mxu1  ;;  %v993_v42 = vadd.f32 %v992_v34, %v962_v48  ;;  %v924_v43 = vadd.f32 %v923_v32, %v2192_v35  ;;  %v2246_v48 = vadd.f32 %v879_v41, %v616_v58  ;;  %v631_v32 = vpop.permute.xlu1 %630  ;;  %v971_v34 = vmul.f32 %v2238_v22, %v2238_v22 }
 0x2f5   :  { %v882_v56 = vpop.f32.mrb[19].mxu1 }
 0x2f6   :  { %v925_v2 = vadd.f32 %v924_v43, %v2197_v24  ;;  %v994_v3 = vadd.f32 %v993_v42, %v963_v63  ;;  %v883_v54 = vadd.f32 %v882_v56, %v621_v5  ;;  %v888_v42 = vadd.f32 %v1543_v29, %v626_v31 }
 0x2f8   :  { %v995_v7 = vadd.f32 %v994_v3, %v964_v44  ;;  %v926_v12 = vadd.f32 %v925_v2, %v2208_v47  ;;  %v972_v44 = vmul.f32 %v2246_v48, %v2246_v48  ;;  %v636_v3 = vpop.permute.xlu0 %635  ;;  %v973_v41 = vmul.f32 %v883_v54, %v883_v54 }
 0x2fa   :  { %v1547_v15 = vpop.f32.mrb[20].mxu1  ;;  %v927_v60 = vadd.f32 %v926_v12, %v2211_v49  ;;  %v996_v36 = vadd.f32 %v995_v7, %v965_v53  ;;  %v891_v12 = vadd.f32 %v1544_v21, %v631_v32  ;;  %v641_v53 = vpop.permute.xlu1 %640 }
 0x2fb   :  { %v895_v17 = vpop.f32.mrb[21].mxu1 }
 0x2fc   :  { %v1548_v6 = vpop.f32.mrb[22].mxu1  ;;  %v997_v45 = vadd.f32 %v996_v36, %v966_v59  ;;  %v928_v39 = vadd.f32 %v927_v60, %v2215_v9  ;;  %v974_v59 = vmul.f32 %v888_v42, %v888_v42  ;;  %v646_v5 = vpop.permute.xlu0 %645 }
 0x2fd   :  { %v898_v55 = vpop.f32.mrb[23].mxu1  ;;  %v904_v31 = vadd.f32 %v1547_v15, %v646_v5 }
 0x2fe   :  { %v929_v33 = vadd.f32 %v928_v39, %v2224_v50  ;;  %v998_v20 = vadd.f32 %v997_v45, %v967_v61  ;;  %v896_v61 = vadd.f32 %v895_v17, %v636_v3  ;;  %v975_v45 = vmul.f32 %v891_v12, %v891_v12 }
 0x2ff   :  { %v899_v29 = vadd.f32 %v898_v55, %v641_v53 }
 0x300   :  { %v999_v57 = vadd.f32 %v998_v20, %v968_v8  ;;  %v930_v37 = vadd.f32 %v929_v33, %v2230_v16  ;;  %v976_v8 = vmul.f32 %v896_v61, %v896_v61 }
 0x302   :  { %v931_v0 = vadd.f32 %v930_v37, %v2233_v19  ;;  %v1000_v14 = vadd.f32 %v999_v57, %v969_v28  ;;  %v651_v57 = vpop.permute.xlu1 %650 }
 0x303   :  { %v907_v28 = vadd.f32 %v1548_v6, %v651_v57 }
 0x304   :  { %v1001_v63 = vadd.f32 %v1000_v14, %v970_v27  ;;  %v932_v23 = vadd.f32 %v931_v0, %v2238_v22  ;;  %v977_v27 = vmul.f32 %v899_v29, %v899_v29  ;;  %v978_v0 = vmul.f32 %v904_v31, %v904_v31 }
 0x306   :  { %v933_v43 = vadd.f32 %v932_v23, %v2246_v48  ;;  %v1002_v2 = vadd.f32 %v1001_v63, %v971_v34  ;;  %v979_v34 = vmul.f32 %v907_v28, %v907_v28 }
 0x308   :  { %v1003_v7 = vadd.f32 %v1002_v2, %v972_v44  ;;  %v934_v58 = vadd.f32 %v933_v43, %v883_v54 }
 0x30a   :  { %v935_v60 = vadd.f32 %v934_v58, %v888_v42  ;;  %v1004_v36 = vadd.f32 %v1003_v7, %v973_v41 }
 0x30c   :  { %v1005_v39 = vadd.f32 %v1004_v36, %v974_v59  ;;  %v936_v56 = vadd.f32 %v935_v60, %v891_v12  ;;  %v1151_v59 = vpop.permute.xlu0 %1150 }
 0x30e   :  { %v937_v33 = vadd.f32 %v936_v56, %v896_v61  ;;  %v1006_v20 = vadd.f32 %v1005_v39, %v975_v45  ;;  %v1156_v45 = vpop.permute.xlu1 %1155 }
 0x310   :  { %v1007_v37 = vadd.f32 %v1006_v20, %v976_v8  ;;  %v938_v21 = vadd.f32 %v937_v33, %v899_v29  ;;  %v1161_v33 = vpop.permute.xlu0 %1160 }
 0x312   :  { %v939_v14 = vadd.f32 %v938_v21, %v904_v31  ;;  %v1008_v32 = vadd.f32 %v1007_v37, %v977_v27  ;;  %v1166_v20 = vpop.permute.xlu1 %1165 }
 0x314   :  { %v940_v63 = vadd.f32 %v939_v14, %v907_v28  ;;  %v1009_v17 = vadd.f32 %v1008_v32, %v978_v0 }
 0x316   :  { %v941_v23 = vrot.slane %v940_v63, 4  ;;  %v1010_v43 = vadd.f32 %v1009_v17, %v979_v34  ;;  %v1176_v32 = vpop.permute.xlu1 %1175 }
 0x318   :  { %v942_v44 = vadd.f32 %v941_v23, %v940_v63  ;;  %v1011_v55 = vrot.slane %v1010_v43, 4 }
 0x31a   :  { %v943_v2 = vrot.slane %v942_v44, 2  ;;  %v1012_v15 = vadd.f32 %v1011_v55, %v1010_v43 }
 0x31c   :  { %v944_v3 = vadd.f32 %v943_v2, %v942_v44  ;;  %v1013_v7 = vrot.slane %v1012_v15, 2 }
 0x31e   :  { %v945_v58 = vrot.slane %v944_v3, 1  ;;  %v1014_v41 = vadd.f32 %v1013_v7, %v1012_v15 }
 0x320   :  { %v946_v53 = vadd.f32 %v945_v58, %v944_v3  ;;  %v1015_v6 = vrot.slane %v1014_v41, 1 }
 0x322   :  { %v2254_v60 = vmul.f32 0.006666667, %v946_v53  ;;  %v1016_v36 = vadd.f32 %v1015_v6, %v1014_v41 }
 0x324   :  { %v2256_v39 = vmul.f32 0.006666667, %v1016_v36  ;;  %v2260_v56 = vmul.f32 %v2254_v60, %v2254_v60  ;;  %v2266_v8 = vsub.f32 %v2224_v50, %v2254_v60  ;;  %v2270_v57 = vsub.f32 %v2230_v16, %v2254_v60 }
 0x325   :  { %v2274_v37 = vsub.f32 %v2233_v19, %v2254_v60  ;;  %v2278_v21 = vsub.f32 %v2238_v22, %v2254_v60  ;;  %v2282_v27 = vsub.f32 %v2246_v48, %v2254_v60  ;;  %v2285_v50 = vsub.f32 %v883_v54, %v2254_v60  ;;  %v1171_v54 = vpop.permute.xlu0 %1170 }
 0x326   :  { %v1019_v5 = vsub.f32 %v2256_v39, %v2260_v56  ;;  %v2288_v0 = vsub.f32 %v888_v42, %v2254_v60  ;;  %v2291_v16 = vsub.f32 %v891_v12, %v2254_v60  ;;  %v2294_v19 = vsub.f32 %v896_v61, %v2254_v60  ;;  %v1186_v61 = vpop.permute.xlu1 %1185 }
 0x327   :  { %v2297_v14 = vsub.f32 %v899_v29, %v2254_v60  ;;  %v2300_v22 = vsub.f32 %v904_v31, %v2254_v60  ;;  %v2303_v48 = vsub.f32 %v907_v28, %v2254_v60  ;;  %v1020_v42 = vsub.f32 %v2111_v4, %v2254_v60 }
 0x328   :  { %v1021_v12 = vsub.f32 %v2115_v11, %v2254_v60  ;;  %v1022_v29 = vsub.f32 %v2113_v10, %v2254_v60  ;;  %v1023_v28 = vsub.f32 %v2119_v13, %v2254_v60  ;;  %v1024_v43 = vsub.f32 %v2132_v62, %v2254_v60 }
 0x329   :  { %v1181_v34 = vpop.permute.xlu0 %1180  ;;  %v1052_v63 = vmul.f32 0.2, %v1020_v42  ;;  %v1025_v11 = vsub.f32 %v2140_v25, %v2254_v60  ;;  %v1026_v10 = vsub.f32 %v2138_v40, %v2254_v60  ;;  %v1027_v53 = vsub.f32 %v2144_v30, %v2254_v60 }
 0x32a   :  { %v1053_v17 = vmul.f32 0.2, %v1021_v12  ;;  %v1196_v23 = vpop.permute.xlu1 %1195  ;;  %v1054_v44 = vmul.f32 0.2, %v1022_v29  ;;  %v1055_v2 = vmul.f32 0.2, %v1023_v28  ;;  %v1028_v36 = vsub.f32 %v2149_v38, %v2254_v60 }
 0x32b   :  { %v1084_v55 = vmax.f32 %v1020_v42, %v1052_v63  ;;  %v1056_v3 = vmul.f32 0.2, %v1024_v43  ;;  %v1057_v62 = vmul.f32 0.2, %v1025_v11  ;;  %v1058_v42 = vmul.f32 0.2, %v1026_v10 }
 0x32c   :  { %v1085_v4 = vmax.f32 %v1021_v12, %v1053_v17  ;;  %v1086_v7 = vmax.f32 %v1022_v29, %v1054_v44  ;;  %v1087_v6 = vmax.f32 %v1023_v28, %v1055_v2  ;;  %v1029_v40 = vsub.f32 %v2154_v46, %v2254_v60 }
 0x32d   :  { %v1191_v31 = vpop.permute.xlu0 %1190  ;;  %v1308_v58 = vmul.f32 %v1151_v59, %v1084_v55  ;;  %v1088_v25 = vmax.f32 %v1024_v43, %v1056_v3  ;;  %v1059_v29 = vmul.f32 0.2, %v1027_v53  ;;  %v1089_v59 = vmax.f32 %v1025_v11, %v1057_v62 }
 0x32e   :  { %v1309_v41 = vmul.f32 %v1156_v45, %v1085_v4  ;;  %v1206_v13 = vpop.permute.xlu1 %1205  ;;  %v1310_v12 = vmul.f32 %v1161_v33, %v1086_v7  ;;  %v1311_v45 = vmul.f32 %v1166_v20, %v1087_v6  ;;  %v1030_v30 = vsub.f32 %v2162_v51, %v2254_v60 }
 0x32f   :  { %v1060_v28 = vmul.f32 0.2, %v1028_v36  ;;  %v1090_v4 = vmax.f32 %v1026_v10, %v1058_v42  ;;  %v1312_v2 = vmul.f32 %v1171_v54, %v1088_v25  ;;  %v1031_v33 = vsub.f32 %v2168_v52, %v2254_v60 }
 0x330   :  { %v1340_v63 = vadd.f32 %v1309_v41, %v1308_v58  ;;  %v1061_v43 = vmul.f32 0.2, %v1029_v40  ;;  %v1091_v3 = vmax.f32 %v1027_v53, %v1059_v29  ;;  %v1313_v7 = vmul.f32 %v1176_v32, %v1089_v59 }
 0x331   :  { %v1201_v15 = vpop.permute.xlu0 %1200  ;;  %v1032_v20 = vsub.f32 %v2176_v1, %v2254_v60  ;;  %v1062_v11 = vmul.f32 0.2, %v1030_v30  ;;  %v1092_v41 = vmax.f32 %v1028_v36, %v1060_v28  ;;  %v1314_v62 = vmul.f32 %v1181_v34, %v1090_v4 }
 0x332   :  { %v1341_v44 = vadd.f32 %v1340_v63, %v1310_v12  ;;  %v1216_v55 = vpop.permute.xlu1 %1215  ;;  %v1033_v54 = vsub.f32 %v2182_v26, %v2254_v60  ;;  %v1063_v10 = vmul.f32 0.2, %v1031_v33  ;;  %v1093_v42 = vmax.f32 %v1029_v40, %v1061_v43 }
 0x333   :  { %v1315_v25 = vmul.f32 %v1186_v61, %v1091_v3  ;;  %v1034_v32 = vsub.f32 %v2186_v18, %v2254_v60  ;;  %v1064_v53 = vmul.f32 0.2, %v1032_v20  ;;  %v1094_v12 = vmax.f32 %v1030_v30, %v1062_v11 }
 0x334   :  { %v1342_v38 = vadd.f32 %v1341_v44, %v1311_v45  ;;  %v1316_v63 = vmul.f32 %v1191_v31, %v1092_v41  ;;  %v1035_v34 = vsub.f32 %v2192_v35, %v2254_v60  ;;  %v1065_v36 = vmul.f32 0.2, %v1033_v54 }
 0x335   :  { %v1211_v17 = vpop.permute.xlu0 %1210  ;;  %v1095_v59 = vmax.f32 %v1031_v33, %v1063_v10  ;;  %v1317_v45 = vmul.f32 %v1196_v23, %v1093_v42  ;;  %v1036_v61 = vsub.f32 %v2197_v24, %v2254_v60  ;;  %v1066_v40 = vmul.f32 0.2, %v1034_v32 }
 0x336   :  { %v1343_v58 = vadd.f32 %v1342_v38, %v1312_v2  ;;  %v1226_v51 = vpop.permute.xlu1 %1225  ;;  %v1096_v28 = vmax.f32 %v1032_v20, %v1064_v53  ;;  %v1318_v4 = vmul.f32 %v1201_v15, %v1094_v12  ;;  %v1037_v31 = vsub.f32 %v2208_v47, %v2254_v60 }
 0x337   :  { %v1067_v30 = vmul.f32 0.2, %v1035_v34  ;;  %v1097_v2 = vmax.f32 %v1033_v54, %v1065_v36  ;;  %v1319_v38 = vmul.f32 %v1206_v13, %v1095_v59  ;;  %v1038_v23 = vsub.f32 %v2211_v49, %v2254_v60 }
 0x338   :  { %v1344_v6 = vadd.f32 %v1343_v58, %v1313_v7  ;;  %v1068_v33 = vmul.f32 0.2, %v1036_v61  ;;  %v1098_v3 = vmax.f32 %v1034_v32, %v1066_v40  ;;  %v1320_v7 = vmul.f32 %v1211_v17, %v1096_v28 }
 0x339   :  { %v1221_v46 = vpop.permute.xlu0 %1220  ;;  %v1039_v15 = vsub.f32 %v2215_v9, %v2254_v60  ;;  %v1069_v20 = vmul.f32 0.2, %v1037_v31  ;;  %v1099_v11 = vmax.f32 %v1035_v34, %v1067_v30  ;;  %v1321_v41 = vmul.f32 %v1216_v55, %v1097_v2 }
 0x33a   :  { %v1345_v52 = vadd.f32 %v1344_v6, %v1314_v62  ;;  %v1236_v26 = vpop.permute.xlu1 %1235  ;;  %v1070_v62 = vmul.f32 0.2, %v1038_v23  ;;  %v1100_v6 = vmax.f32 %v1036_v61, %v1068_v33  ;;  %v1322_v13 = vmul.f32 %v1221_v46, %v1098_v3 }
 0x33b   :  { %v1071_v42 = vmul.f32 0.2, %v1039_v15  ;;  %v1323_v49 = vmul.f32 %v1226_v51, %v1099_v11  ;;  %v1072_v17 = vmul.f32 0.2, %v2266_v8  ;;  %v1073_v9 = vmul.f32 0.2, %v2270_v57 }
 0x33c   :  { %v1346_v29 = vadd.f32 %v1345_v52, %v1315_v25  ;;  %v1101_v25 = vmax.f32 %v1037_v31, %v1069_v20  ;;  %v1102_v53 = vmax.f32 %v1038_v23, %v1070_v62  ;;  %v1074_v46 = vmul.f32 0.2, %v2274_v37 }
 0x33d   :  { %v1231_v1 = vpop.permute.xlu0 %1230  ;;  %v1103_v60 = vmax.f32 %v1039_v15, %v1071_v42  ;;  %v1104_v36 = vmax.f32 %v2266_v8, %v1072_v17  ;;  %v1105_v61 = vmax.f32 %v2270_v57, %v1073_v9  ;;  %v1076_v28 = vmul.f32 0.2, %v2282_v27 }
 0x33e   :  { %v1347_v44 = vadd.f32 %v1346_v29, %v1316_v63  ;;  %v1246_v24 = vpop.permute.xlu1 %1245  ;;  %v1324_v12 = vmul.f32 %v1231_v1, %v1100_v6  ;;  %v1325_v55 = vmul.f32 %v1236_v26, %v1101_v25  ;;  %v1077_v30 = vmul.f32 0.2, %v2285_v50 }
 0x33f   :  { %v1327_v40 = vmul.f32 %v1246_v24, %v1103_v60  ;;  %v1108_v57 = vmax.f32 %v2282_v27, %v1076_v28  ;;  %v1079_v3 = vmul.f32 0.2, %v2291_v16  ;;  %v1080_v15 = vmul.f32 0.2, %v2294_v19 }
 0x340   :  { %v1348_v18 = vadd.f32 %v1347_v44, %v1317_v45  ;;  %v1075_v44 = vmul.f32 0.2, %v2278_v21  ;;  %v1083_v25 = vmul.f32 0.2, %v2303_v48 }
 0x341   :  { %v1241_v35 = vpop.permute.xlu0 %1240  ;;  %v1111_v27 = vmax.f32 %v2291_v16, %v1079_v3 }
 0x342   :  { %v1349_v43 = vadd.f32 %v1348_v18, %v1318_v4  ;;  %v1256_v32 = vpop.permute.xlu1 %1255  ;;  %v1326_v59 = vmul.f32 %v1241_v35, %v1102_v53  ;;  %v1106_v4 = vmax.f32 %v2274_v37, %v1074_v46  ;;  %v1107_v8 = vmax.f32 %v2278_v21, %v1075_v44 }
 0x343   :  { %v1329_v2 = vmul.f32 %v1256_v32, %v1105_v61  ;;  %v1078_v35 = vmul.f32 0.2, %v2288_v0  ;;  %v1109_v37 = vmax.f32 %v2285_v50, %v1077_v30  ;;  %v1112_v50 = vmax.f32 %v2294_v19, %v1080_v15 }
 0x344   :  { %v1350_v58 = vadd.f32 %v1349_v43, %v1319_v38 }
 0x345   :  { %v1251_v10 = vpop.permute.xlu0 %1250  ;;  %v1110_v21 = vmax.f32 %v2288_v0, %v1078_v35 }
 0x346   :  { %v1351_v47 = vadd.f32 %v1350_v58, %v1320_v7  ;;  %v1266_v51 = vpop.permute.xlu1 %1265  ;;  %v1328_v26 = vmul.f32 %v1251_v10, %v1104_v36 }
 0x347   :  { %v1331_v7 = vmul.f32 %v1266_v51, %v1107_v8 }
 0x348   :  { %v1352_v54 = vadd.f32 %v1351_v47, %v1321_v41  ;;  %v1081_v47 = vmul.f32 0.2, %v2297_v14 }
 0x349   :  { %v1261_v34 = vpop.permute.xlu0 %1260 }
 0x34a   :  { %v1353_v52 = vadd.f32 %v1352_v54, %v1322_v13  ;;  %v1276_v43 = vpop.permute.xlu1 %1275  ;;  %v1330_v23 = vmul.f32 %v1261_v34, %v1106_v4  ;;  %v1082_v13 = vmul.f32 0.2, %v2300_v22  ;;  %v1113_v0 = vmax.f32 %v2297_v14, %v1081_v47 }
 0x34b   :  { %v1333_v62 = vmul.f32 %v1276_v43, %v1109_v37  ;;  %v1377_v14 = vadd.f32 1e-05, %v1019_v5 }
 0x34c   :  { %v1354_v63 = vadd.f32 %v1353_v52, %v1323_v49  ;;  %v1114_v17 = vmax.f32 %v2300_v22, %v1082_v13 }
 0x34d   :  { %v1271_v31 = vpop.permute.xlu0 %1270  ;;  %1602 = vrsqrt.f32 %v1377_v14 }
 0x34e   :  { %v1355_v29 = vadd.f32 %v1354_v63, %v1324_v12  ;;  %v1332_v20 = vmul.f32 %v1271_v31, %v1108_v57  ;;  %v1286_v41 = vpop.permute.xlu1 %1285  ;;  %v1115_v12 = vmax.f32 %v2303_v48, %v1083_v25 }
 0x34f   :  { %v1335_v49 = vmul.f32 %v1286_v41, %v1111_v27 }
 0x350   :  { %v1356_v45 = vadd.f32 %v1355_v29, %v1325_v55 }
 0x351   :  { %v1281_v24 = vpop.permute.xlu0 %1280 }
 0x352   :  { %v1357_v1 = vadd.f32 %v1356_v45, %v1326_v59  ;;  %v1334_v54 = vmul.f32 %v1281_v24, %v1110_v21  ;;  %v1296_v32 = vpop.permute.xlu1 %1295  ;;  %v1386_v59 = vlaneseq }
 0x353   :  { %v1337_v63 = vmul.f32 %v1296_v32, %v1113_v0 }
 0x354   :  { %v1358_v18 = vadd.f32 %v1357_v1, %v1327_v40  ;;  %v1387_v51 = vshrl.u32 %v1386_v59, 7 }
 0x355   :  { %v1291_v42 = vpop.permute.xlu0 %1290 }
 0x356   :  { %v1359_v38 = vadd.f32 %v1358_v18, %v1328_v26  ;;  %v1336_v53 = vmul.f32 %v1291_v42, %v1112_v50  ;;  %v1306_v29 = vpop.permute.xlu1 %1305  ;;  %v1388_v61 = vsub.s32 0, %v1387_v51 }
 0x357   :  { %v1339_v34 = vmul.f32 %v1306_v29, %v1115_v12  ;;  %v1603_v4 = vpop.eup %1602 }
 0x358   :  { %v1360_v33 = vadd.f32 %v1359_v38, %v1329_v2 }
 0x359   :  { %v1301_v60 = vpop.permute.xlu0 %1300 }
 0x35a   :  { %v1361_v58 = vadd.f32 %v1360_v33, %v1330_v23  ;;  %v1338_v19 = vmul.f32 %v1301_v60, %v1114_v17 }
 0x35c   :  { %v1362_v11 = vadd.f32 %v1361_v58, %v1331_v7 }
 0x35d   :  { %v1384_v1 = vpop.permute.xlu0 %1383 }
 0x35e   :  { %v1363_v6 = vadd.f32 %v1362_v11, %v1332_v20  ;;  %v1389_v26 = vrot.slane %v1384_v1, %v1388_v61 }
 0x360   :  { %v1364_v10 = vadd.f32 %v1363_v6, %v1333_v62 }
 0x362   :  { %v1365_v52 = vadd.f32 %v1364_v10, %v1334_v54 }
 0x364   :  { %v1366_v16 = vadd.f32 %v1365_v52, %v1335_v49 }
 0x366   :  { %v1367_v9 = vadd.f32 %v1366_v16, %v1336_v53 }
 0x368   :  { %v1368_v55 = vadd.f32 %v1367_v9, %v1337_v63 }
 0x36a   :  { %v1369_v46 = vadd.f32 %v1368_v55, %v1338_v19 }
 0x36c   :  { %v1370_v36 = vadd.f32 %v1369_v46, %v1339_v34 }
 0x36e   :  { %v1371_v45 = vrot.slane %v1370_v36, 4 }
 0x370   :  { %v1372_v22 = vadd.f32 %v1371_v45, %v1370_v36 }
 0x372   :  { %v1373_v44 = vrot.slane %v1372_v22, 2 }
 0x374   :  { %v1374_v48 = vadd.f32 %v1373_v44, %v1372_v22 }
 0x376   :  { %v1375_v40 = vrot.slane %v1374_v48, 1 }
 0x378   :  { %v1376_v28 = vadd.f32 %v1375_v40, %v1374_v48 }
 0x37a   :  { %v1379_v18 = vmul.f32 %v1603_v4, %v1376_v28 }
 0x37c   :  { %v1390_v31 = vadd.f32 %v1389_v26, %v1379_v18 }
 0x37e   :  { %1391 = vst [vmem:[%s2382_s7] sm:$0x1] %v1390_v31 }

</bundles_post_ra>
